<compile_context>
chip_gen: v5e
topology: v5e:2x2
jax: 0.10.0
libtpu: 0.0.40
codegen_flags: <defaults>
</compile_context>

<pallas_src>
import jax
import jax.numpy as jnp
from jax.experimental import pallas as pl
from jax.experimental.pallas import tpu as pltpu

LANE = 128      # TPU lane width (last dim alignment)
SUBLANE = 8     # f32 sublane width (second-to-last dim alignment)


def _round_up(n, m):
    return ((n + m - 1) // m) * m


def _choose_batch_tile(batch, cap=1024):
    """Pick the batch tile first, pad the batch to it afterwards.

    Small batches get a single tile (grid=(1,)); large batches get 512/1024
    row tiles (measured ~85% of HBM roofline) with the batch padded up to a
    multiple, so awkward batch sizes can never fall back to tiny tiles.
    """
    b8 = _round_up(batch, SUBLANE)
    if b8 <= cap:
        return b8
    for cand in (cap, cap // 2):          # avoid padding when possible
        if b8 % cand == 0:
            return cand
    return cap


def _mlp_softmax_kernel(x_ref, w1_ref, b1_ref, w2_ref, b2_ref, w3_ref, b3_ref,
                        o_ref):
    # ---- layer 1: Linear + Hardtanh -------------------------------------
    h1 = jnp.dot(x_ref[...], w1_ref[...],
                 preferred_element_type=jnp.float32) + b1_ref[...]
    h1 = jnp.clip(h1, -1.0, 1.0)                       # nn.Hardtanh()

    # ---- layer 2: Linear + Hardtanh -------------------------------------
    h2 = jnp.dot(h1, w2_ref[...],
                 preferred_element_type=jnp.float32) + b2_ref[...]
    h2 = jnp.clip(h2, -1.0, 1.0)                       # nn.Hardtanh()

    # ---- output layer: Linear + Softmax(dim=-1) --------------------------
    logits = jnp.dot(h2, w3_ref[...],
                     preferred_element_type=jnp.float32) + b3_ref[...]
    m = jnp.max(logits, axis=-1, keepdims=True)        # numerically stable
    e = jnp.exp(logits - m)
    s = jnp.sum(e, axis=-1, keepdims=True)
    # EUP approximate reciprocal + one Newton refinement (~f32 accuracy);
    # keeps the divide off the VALU slot.
    r = pl.reciprocal(s, approx=True)
    r = r * (2.0 - s * r)
    o_ref[...] = (e * r).astype(o_ref.dtype)


def model2h_forward(x, params, *, batch_tile=None):
    """Full Model2H forward pass as one fused Pallas kernel.

    x:      (B, input_size) float32
    params: dict with w1 (in, h1), b1 (1, h1), w2 (h1, h2), b2 (1, h2),
            w3 (h2, out), b3 (1, out)  -- PyTorch-equivalent, unpadded.
    """
    B, D_in = x.shape
    H1 = params["w1"].shape[1]
    H2 = params["w2"].shape[1]
    D_out = params["w3"].shape[1]

    # ---- batch tiling (feature dims stay at their real sizes) ------------
    tb = _choose_batch_tile(B) if batch_tile is None else int(batch_tile)
    B_p = _round_up(B, tb)
    xp = x if B_p == B else jnp.pad(x, ((0, B_p - B), (0, 0)))
    grid = (B_p // tb,)

    # Weights/biases have constant index maps -> Pallas keeps them resident
    # in VMEM across grid steps (no per-step re-DMA).  Block == full array,
    # so sub-(8,128) dims are legal.
    def resident(shape):
        return pl.BlockSpec(shape, lambda i: (0,) * len(shape))

    # Advisory cost estimate (real, unpadded bytes/flops) for XLA scheduling.
    w_elems = D_in * H1 + H1 * H2 + H2 * D_out
    cost = pl.CostEstimate(
        flops=2 * B_p * w_elems,
        transcendentals=B_p * D_out,
        bytes_accessed=4 * (B_p * (D_in + D_out) + w_elems + H1 + H2 + D_out),
    )

    out = pl.pallas_call(
        _mlp_softmax_kernel,
        out_shape=jax.ShapeDtypeStruct((B_p, D_out), jnp.float32),
        grid_spec=pltpu.PrefetchScalarGridSpec(
            num_scalar_prefetch=0,
            grid=grid,
            in_specs=[
                pl.BlockSpec((tb, D_in), lambda i: (i, 0)),   # x (tiled)
                resident((D_in, H1)),                         # w1
                resident((1, H1)),                            # b1
                resident((H1, H2)),                           # w2
                resident((1, H2)),                            # b2
                resident((H2, D_out)),                        # w3
                resident((1, D_out)),                         # b3
            ],
            out_specs=pl.BlockSpec((tb, D_out), lambda i: (i, 0)),
        ),
        compiler_params=pltpu.CompilerParams(
            dimension_semantics=("parallel",)),
        cost_estimate=cost,
    )(xp, params["w1"], params["b1"], params["w2"], params["b2"],
      params["w3"], params["b3"])

    # Strip batch padding only if it was added; no lane slicing needed.
    return out if B_p == B else out[:B]


def init_params(key, input_size, hid1, hid2, output_size):
    """Deterministic PyTorch-style (uniform +/- 1/sqrt(fan_in)) init."""
    ks = jax.random.split(key, 6)

    def linear(kw, kb, fan_in, fan_out):
        bound = 1.0 / jnp.sqrt(jnp.float32(fan_in))
        w = jax.random.uniform(kw, (fan_in, fan_out), jnp.float32,
                               -bound, bound)
        b = jax.random.uniform(kb, (1, fan_out), jnp.float32, -bound, bound)
        return w, b

    w1, b1 = linear(ks[0], ks[1], input_size, hid1)
    w2, b2 = linear(ks[2], ks[3], hid1, hid2)
    w3, b3 = linear(ks[4], ks[5], hid2, output_size)
    return dict(w1=w1, b1=b1, w2=w2, b2=b2, w3=w3, b3=b3)


def reference_forward(x, p):
    """Plain-JAX reference matching PyTorch semantics exactly."""
    h1 = jnp.clip(x @ p["w1"] + p["b1"], -1.0, 1.0)
    h2 = jnp.clip(h1 @ p["w2"] + p["b2"], -1.0, 1.0)
    return jax.nn.softmax(h2 @ p["w3"] + p["b3"], axis=-1)


if __name__ == "__main__":
    # Shapes consistent with the module's forward
    # (input_size, HID1N, HID2N, output_size).
    B, INPUT_SIZE, HID1N, HID2N, OUTPUT_SIZE = 256, 64, 32, 16, 8

    key = jax.random.PRNGKey(0)
    kx, kp = jax.random.split(key)
    x = jax.random.normal(kx, (B, INPUT_SIZE), dtype=jnp.float32)
    params = init_params(kp, INPUT_SIZE, HID1N, HID2N, OUTPUT_SIZE)

    out = model2h_forward(x, params)
    out = jax.block_until_ready(out)

    ref = reference_forward(x, params)
    assert out.shape == (B, OUTPUT_SIZE)
    assert jnp.allclose(out, ref, atol=1e-5, rtol=1e-5), "mismatch vs reference"
    assert jnp.allclose(jnp.sum(out, axis=-1), 1.0, atol=1e-5), \
        "softmax rows must sum to 1"

    # Exercise the awkward-batch path (pad-to-tile + final row slice).
    x2 = jax.random.normal(kx, (B + 3, INPUT_SIZE), dtype=jnp.float32)
    out2 = jax.block_until_ready(model2h_forward(x2, params))
    assert out2.shape == (B + 3, OUTPUT_SIZE)
    assert jnp.allclose(out2, reference_forward(x2, params),
                        atol=1e-5, rtol=1e-5), "mismatch (ragged batch)"

    print("KERNEL_OK")
</pallas_src>

<mosaic_0001>
module attributes {stable_mosaic.version = 11 : i64} {
  func.func @_mlp_softmax_kernel(%arg0: i32, %arg1: memref<256x64xf32, #tpu.memory_space<vmem>>, %arg2: memref<64x32xf32, #tpu.memory_space<vmem>>, %arg3: memref<1x32xf32, #tpu.memory_space<vmem>>, %arg4: memref<32x16xf32, #tpu.memory_space<vmem>>, %arg5: memref<1x16xf32, #tpu.memory_space<vmem>>, %arg6: memref<16x8xf32, #tpu.memory_space<vmem>>, %arg7: memref<1x8xf32, #tpu.memory_space<vmem>>, %arg8: memref<256x8xf32, #tpu.memory_space<vmem>>) attributes {dimension_semantics = [#tpu.dimension_semantics<parallel>], iteration_bounds = array<i64: 1>, scalar_prefetch = 0 : i64, scratch_operands = 0 : i64, tpu.core_type = #tpu.core_type<tc>, window_params = [{transform_indices = @transform_0, window_bounds = array<i64: 256, 64>}, {pipeline_mode = #tpu.pipeline_mode<synchronous>, transform_indices = @transform_1, window_bounds = array<i64: 64, 32>}, {pipeline_mode = #tpu.pipeline_mode<synchronous>, transform_indices = @transform_2, window_bounds = array<i64: 1, 32>}, {pipeline_mode = #tpu.pipeline_mode<synchronous>, transform_indices = @transform_3, window_bounds = array<i64: 32, 16>}, {pipeline_mode = #tpu.pipeline_mode<synchronous>, transform_indices = @transform_4, window_bounds = array<i64: 1, 16>}, {pipeline_mode = #tpu.pipeline_mode<synchronous>, transform_indices = @transform_5, window_bounds = array<i64: 16, 8>}, {pipeline_mode = #tpu.pipeline_mode<synchronous>, transform_indices = @transform_6, window_bounds = array<i64: 1, 8>}, {transform_indices = @transform_7, window_bounds = array<i64: 256, 8>}]} {
    %c0 = arith.constant 0 : index
    %c0_0 = arith.constant 0 : index
    %0 = vector.load %arg1[%c0, %c0_0] : memref<256x64xf32, #tpu.memory_space<vmem>>, vector<256x64xf32>
    %c0_1 = arith.constant 0 : index
    %c0_2 = arith.constant 0 : index
    %1 = vector.load %arg2[%c0_1, %c0_2] : memref<64x32xf32, #tpu.memory_space<vmem>>, vector<64x32xf32>
    %cst = arith.constant dense<0.000000e+00> : vector<256x32xf32>
    %2 = tpu.matmul %0, %1, %cst {dimension_numbers = #tpu.dot_dimension_numbers<[1], [0], [0], [1], [0, 0, 1, 1], [], []>} : vector<256x64xf32>, vector<64x32xf32>, vector<256x32xf32> -> vector<256x32xf32>
    %c0_3 = arith.constant 0 : index
    %c0_4 = arith.constant 0 : index
    %3 = vector.load %arg3[%c0_3, %c0_4] : memref<1x32xf32, #tpu.memory_space<vmem>>, vector<1x32xf32>
    %4 = vector.broadcast %3 : vector<1x32xf32> to vector<256x32xf32>
    %5 = arith.addf %2, %4 : vector<256x32xf32>
    %cst_5 = arith.constant -1.000000e+00 : f32
    %cst_6 = arith.constant 1.000000e+00 : f32
    %6 = vector.broadcast %cst_5 : f32 to vector<256x32xf32>
    %7 = arith.maximumf %6, %5 : vector<256x32xf32>
    %8 = vector.broadcast %cst_6 : f32 to vector<256x32xf32>
    %9 = arith.minimumf %8, %7 : vector<256x32xf32>
    %c0_7 = arith.constant 0 : index
    %c0_8 = arith.constant 0 : index
    %10 = vector.load %arg4[%c0_7, %c0_8] : memref<32x16xf32, #tpu.memory_space<vmem>>, vector<32x16xf32>
    %cst_9 = arith.constant dense<0.000000e+00> : vector<256x16xf32>
    %11 = tpu.matmul %9, %10, %cst_9 {dimension_numbers = #tpu.dot_dimension_numbers<[1], [0], [0], [1], [0, 0, 1, 1], [], []>} : vector<256x32xf32>, vector<32x16xf32>, vector<256x16xf32> -> vector<256x16xf32>
    %c0_10 = arith.constant 0 : index
    %c0_11 = arith.constant 0 : index
    %12 = vector.load %arg5[%c0_10, %c0_11] : memref<1x16xf32, #tpu.memory_space<vmem>>, vector<1x16xf32>
    %13 = vector.broadcast %12 : vector<1x16xf32> to vector<256x16xf32>
    %14 = arith.addf %11, %13 : vector<256x16xf32>
    %cst_12 = arith.constant -1.000000e+00 : f32
    %cst_13 = arith.constant 1.000000e+00 : f32
    %15 = vector.broadcast %cst_12 : f32 to vector<256x16xf32>
    %16 = arith.maximumf %15, %14 : vector<256x16xf32>
    %17 = vector.broadcast %cst_13 : f32 to vector<256x16xf32>
    %18 = arith.minimumf %17, %16 : vector<256x16xf32>
    %c0_14 = arith.constant 0 : index
    %c0_15 = arith.constant 0 : index
    %19 = vector.load %arg6[%c0_14, %c0_15] : memref<16x8xf32, #tpu.memory_space<vmem>>, vector<16x8xf32>
    %cst_16 = arith.constant dense<0.000000e+00> : vector<256x8xf32>
    %20 = tpu.matmul %18, %19, %cst_16 {dimension_numbers = #tpu.dot_dimension_numbers<[1], [0], [0], [1], [0, 0, 1, 1], [], []>} : vector<256x16xf32>, vector<16x8xf32>, vector<256x8xf32> -> vector<256x8xf32>
    %c0_17 = arith.constant 0 : index
    %c0_18 = arith.constant 0 : index
    %21 = vector.load %arg7[%c0_17, %c0_18] : memref<1x8xf32, #tpu.memory_space<vmem>>, vector<1x8xf32>
    %22 = vector.broadcast %21 : vector<1x8xf32> to vector<256x8xf32>
    %23 = arith.addf %20, %22 : vector<256x8xf32>
    %cst_19 = arith.constant dense<0xFF800000> : vector<256xf32>
    %24 = vector.multi_reduction <maximumf>, %23, %cst_19 [1] : vector<256x8xf32> to vector<256xf32>
    %25 = vector.shape_cast %24 : vector<256xf32> to vector<256x1xf32>
    %26 = vector.broadcast %25 : vector<256x1xf32> to vector<256x8xf32>
    %27 = arith.subf %23, %26 : vector<256x8xf32>
    %28 = math.exp %27 : vector<256x8xf32>
    %cst_20 = arith.constant dense<0.000000e+00> : vector<256xf32>
    %29 = vector.multi_reduction <add>, %28, %cst_20 [1] : vector<256x8xf32> to vector<256xf32>
    %30 = vector.shape_cast %29 : vector<256xf32> to vector<256x1xf32>
    %31 = tpu.reciprocal %30 {approx = true} : vector<256x1xf32> -> vector<256x1xf32>
    %32 = arith.mulf %30, %31 : vector<256x1xf32>
    %cst_21 = arith.constant 2.000000e+00 : f32
    %33 = vector.broadcast %cst_21 : f32 to vector<256x1xf32>
    %34 = arith.subf %33, %32 : vector<256x1xf32>
    %35 = arith.mulf %31, %34 : vector<256x1xf32>
    %36 = vector.broadcast %35 : vector<256x1xf32> to vector<256x8xf32>
    %37 = arith.mulf %28, %36 : vector<256x8xf32>
    %c0_22 = arith.constant 0 : index
    %c0_23 = arith.constant 0 : index
    %38 = vector.load %arg8[%c0_22, %c0_23] : memref<256x8xf32, #tpu.memory_space<vmem>>, vector<256x8xf32>
    tpu.vector_store %arg8[%c0_22, %c0_23], %37 {strides = array<i32>} : memref<256x8xf32, #tpu.memory_space<vmem>>, vector<256x8xf32>,
    return
  }
  func.func @transform_0(%arg0: i32) -> (i32, i32) {
    %c0_i32 = arith.constant 0 : i32
    %c0_i32_0 = arith.constant 0 : i32
    return %arg0, %c0_i32 : i32, i32
  }
  func.func @transform_1(%arg0: i32) -> (i32, i32) {
    %c0_i32 = arith.constant 0 : i32
    %c0_i32_0 = arith.constant 0 : i32
    %c0_i32_1 = arith.constant 0 : i32
    return %c0_i32, %c0_i32_0 : i32, i32
  }
  func.func @transform_2(%arg0: i32) -> (i32, i32) {
    %c0_i32 = arith.constant 0 : i32
    %c0_i32_0 = arith.constant 0 : i32
    %c0_i32_1 = arith.constant 0 : i32
    return %c0_i32, %c0_i32_0 : i32, i32
  }
  func.func @transform_3(%arg0: i32) -> (i32, i32) {
    %c0_i32 = arith.constant 0 : i32
    %c0_i32_0 = arith.constant 0 : i32
    %c0_i32_1 = arith.constant 0 : i32
    return %c0_i32, %c0_i32_0 : i32, i32
  }
  func.func @transform_4(%arg0: i32) -> (i32, i32) {
    %c0_i32 = arith.constant 0 : i32
    %c0_i32_0 = arith.constant 0 : i32
    %c0_i32_1 = arith.constant 0 : i32
    return %c0_i32, %c0_i32_0 : i32, i32
  }
  func.func @transform_5(%arg0: i32) -> (i32, i32) {
    %c0_i32 = arith.constant 0 : i32
    %c0_i32_0 = arith.constant 0 : i32
    %c0_i32_1 = arith.constant 0 : i32
    return %c0_i32, %c0_i32_0 : i32, i32
  }
  func.func @transform_6(%arg0: i32) -> (i32, i32) {
    %c0_i32 = arith.constant 0 : i32
    %c0_i32_0 = arith.constant 0 : i32
    %c0_i32_1 = arith.constant 0 : i32
    return %c0_i32, %c0_i32_0 : i32, i32
  }
  func.func @transform_7(%arg0: i32) -> (i32, i32) {
    %c0_i32 = arith.constant 0 : i32
    %c0_i32_0 = arith.constant 0 : i32
    return %arg0, %c0_i32 : i32, i32
  }
}

</mosaic_0001>

<bundles_post_ra>
// kernel: tpu_custom_call.1
= control target key start
LH: loop header
LB: loop body
LE: loop exit
PB: predicated region body
PF: predicated region fallthrough
CT: control target
= control target key end

     0   :  { %vm70_vm0 = vcmask 523264   ;;  %vm352_vm1 = vcmask 261120   ;;  %vm632_vm2 = vcmask 130048   ;;  %vm842_vm3 = vcmask 64512   ;;  %s2477_s1 = inlined_call_operand.vmem [shape: f32[64,32], index: 1, kind: input, shape index: {}]   ;;  %s2478_s2 = inlined_call_operand.vmem [shape: f32[1,32], index: 2, kind: input, shape index: {}]   ;;  %s2479_s0 = inlined_call_operand.vmem [shape: f32[256,64], index: 0, kind: input, shape index: {}]   ;;  %s2480_s3 = inlined_call_operand.vmem [shape: f32[32,16], index: 3, kind: input, shape index: {}]   ;;  %s2481_s4 = inlined_call_operand.vmem [shape: f32[1,16], index: 4, kind: input, shape index: {}]   ;;  %s2482_s5 = inlined_call_operand.vmem [shape: f32[16,8], index: 5, kind: input, shape index: {}]   ;;  %s2483_s6 = inlined_call_operand.vmem [shape: f32[1,8], index: 6, kind: input, shape index: {}]   ;;  %s2484_s7 = inlined_call_operand.vmem [shape: f32[256,8], index: 7, kind: output, shape index: {}]  }
   0x1   :  { %v65_v0 = vld [vmem:[%s2477_s1 + $0x38] sm:$0xff]  ;;  %v64_v1 = vld [vmem:[%s2477_s1 + $0x30] sm:$0xff]  ;;  %v63_v2 = vld [vmem:[%s2477_s1 + $0x28] sm:$0xff] }
   0x2   :  { %175 = vmatpush.msra.mxu0 %v65_v0  ;;  %1487 = vmatpush.msra.mxu3 %v65_v0  ;;  %v62_v3 = vld [vmem:[%s2477_s1 + $0x20] sm:$0xff]  ;;  %v61_v4 = vld [vmem:[%s2477_s1 + $0x18] sm:$0xff]  ;;  %v60_v5 = vld [vmem:[%s2477_s1 + $0x10] sm:$0xff] }
   0x3   :  { %v59_v6 = vld [vmem:[%s2477_s1 + $0x8] sm:$0xff]  ;;  %v58_v7 = vld [vmem:[%s2477_s1] sm:$0xff]  ;;  %v28_v12 = vld [vmem:[%s2479_s0 + $0x10] sm:$0xff] }
   0x4   :  { %176 = vmatpush.msra.mxu0 %v64_v1  ;;  %1488 = vmatpush.msra.mxu3 %v64_v1  ;;  %v26_v8 = vld [vmem:[%s2479_s0] sm:$0xff]  ;;  %v27_v10 = vld [vmem:[%s2479_s0 + $0x8] sm:$0xff]  ;;  %v52_v13 = vld [vmem:[%s2479_s0 + $0xd0] sm:$0xff] }
   0x5   :  { %v50_v9 = vld [vmem:[%s2479_s0 + $0xc0] sm:$0xff]  ;;  %v51_v11 = vld [vmem:[%s2479_s0 + $0xc8] sm:$0xff]  ;;  %v29_v14 = vld [vmem:[%s2479_s0 + $0x18] sm:$0xff] }
   0x6   :  { %177 = vmatpush.msra.mxu0 %v63_v2  ;;  %1489 = vmatpush.msra.mxu3 %v63_v2  ;;  %v53_v15 = vld [vmem:[%s2479_s0 + $0xd8] sm:$0xff]  ;;  %v30_v16 = vld [vmem:[%s2479_s0 + $0x20] sm:$0xff]  ;;  %v31_v18 = vld [vmem:[%s2479_s0 + $0x28] sm:$0xff] }
   0x7   :  { %v54_v17 = vld [vmem:[%s2479_s0 + $0xe0] sm:$0xff]  ;;  %v55_v19 = vld [vmem:[%s2479_s0 + $0xe8] sm:$0xff]  ;;  %v32_v20 = vld [vmem:[%s2479_s0 + $0x30] sm:$0xff] }
   0x8   :  { %178 = vmatpush.msra.mxu0 %v62_v3  ;;  %1490 = vmatpush.msra.mxu3 %v62_v3  ;;  %v56_v21 = vld [vmem:[%s2479_s0 + $0xf0] sm:$0xff]  ;;  %v347_v22 = vld [vmem:[%s2480_s3 + $0x18] sm:$0xff]  ;;  %v34_v25 = vld [vmem:[%s2479_s0 + $0x40] sm:$0xff] }
   0x9   :  { %461 = vmatpush.msra.mxu1 %v347_v22  ;;  %v33_v23 = vld [vmem:[%s2479_s0 + $0x38] sm:$0xff]  ;;  %v346_v26 = vld [vmem:[%s2480_s3 + $0x10] sm:$0xff]  ;;  %v35_v27 = vld [vmem:[%s2479_s0 + $0x48] sm:$0xff] }
   0xa   :  { %179 = vmatpush.msra.mxu0 %v61_v4  ;;  %1491 = vmatpush.msra.mxu3 %v61_v4  ;;  %v57_v24 = vld [vmem:[%s2479_s0 + $0xf8] sm:$0xff]  ;;  %v36_v28 = vld [vmem:[%s2479_s0 + $0x50] sm:$0xff]  ;;  %v345_v29 = vld [vmem:[%s2480_s3 + $0x8] sm:$0xff] }
   0xb   :  { %462 = vmatpush.msra.mxu1 %v346_v26  ;;  %v37_v30 = vld [vmem:[%s2479_s0 + $0x58] sm:$0xff]  ;;  %v38_v31 = vld [vmem:[%s2479_s0 + $0x60] sm:$0xff]  ;;  %v39_v33 = vld [vmem:[%s2479_s0 + $0x68] sm:$0xff] }
   0xc   :  { %180 = vmatpush.msra.mxu0 %v60_v5  ;;  %1492 = vmatpush.msra.mxu3 %v60_v5  ;;  %v344_v32 = vld [vmem:[%s2480_s3] sm:$0xff]  ;;  %v40_v34 = vld [vmem:[%s2479_s0 + $0x70] sm:$0xff]  ;;  %v41_v35 = vld [vmem:[%s2479_s0 + $0x78] sm:$0xff] }
   0xd   :  { %463 = vmatpush.msra.mxu1 %v345_v29  ;;  %v1807_v36 = vld [vmem:[%s2478_s2] ss:$0 sm:$0xff]  ;;  %v43_v43 = vld [vmem:[%s2479_s0 + $0x88] sm:$0xff]  ;;  %v44_v49 = vld [vmem:[%s2479_s0 + $0x90] sm:$0xff] }
   0xe   :  { %181 = vmatpush.msra.mxu0 %v59_v6  ;;  %1493 = vmatpush.msra.mxu3 %v59_v6  ;;  %v42_v38 = vld [vmem:[%s2479_s0 + $0x80] sm:$0xff]  ;;  %v45_v56 = vld [vmem:[%s2479_s0 + $0x98] sm:$0xff]  ;;  %v47_v6 = vld [vmem:[%s2479_s0 + $0xa8] sm:$0xff] }
   0xf   :  { %464 = vmatpush.msra.mxu1 %v344_v32  ;;  %v46_v63 = vld [vmem:[%s2479_s0 + $0xa0] sm:$0xff] }
  0x10   :  { %182 = vmatpush.msra.mxu0 %v58_v7  ;;  %1494 = vmatpush.msra.mxu3 %v58_v7 }
  0x11   :  { %1327 = vmatmul.msk.f32.vlgmr.msra.gmra.mxu0 %vm70_vm0, %v26_v8  ;;  %1351 = vmatmul.msk.f32.vlgmr.msra.gmra.mxu3 %vm70_vm0, %v50_v9 }
  0x12   :  { %1495 = vmatpush.msrb.mxu3 %v347_v22 }
  0x14   :  { %1496 = vmatpush.msrb.mxu3 %v346_v26 }
  0x16   :  { %1497 = vmatpush.msrb.mxu3 %v345_v29 }
  0x18   :  { %1498 = vmatpush.msrb.mxu3 %v344_v32 }
  0x19   :  { %1328 = vmatmul.msk.f32.gmra.mxu0 %vm70_vm0, %v27_v10  ;;  %1352 = vmatmul.msk.f32.gmra.mxu3 %vm70_vm0, %v51_v11 }
  0x21   :  { %1329 = vmatmul.msk.f32.gmra.mxu0 %vm70_vm0, %v28_v12  ;;  %1353 = vmatmul.msk.f32.gmra.mxu3 %vm70_vm0, %v52_v13  ;;  %v48_v13 = vld [vmem:[%s2479_s0 + $0xb0] sm:$0xff] }
  0x29   :  { %1330 = vmatmul.msk.f32.gmra.mxu0 %vm70_vm0, %v29_v14  ;;  %1354 = vmatmul.msk.f32.gmra.mxu3 %vm70_vm0, %v53_v15 }
  0x31   :  { %1331 = vmatmul.msk.f32.gmra.mxu0 %vm70_vm0, %v30_v16  ;;  %1355 = vmatmul.msk.f32.gmra.mxu3 %vm70_vm0, %v54_v17 }
  0x39   :  { %1332 = vmatmul.msk.f32.gmra.mxu0 %vm70_vm0, %v31_v18  ;;  %1356 = vmatmul.msk.f32.gmra.mxu3 %vm70_vm0, %v55_v19 }
  0x41   :  { %1333 = vmatmul.msk.f32.gmra.mxu0 %vm70_vm0, %v32_v20  ;;  %1357 = vmatmul.msk.f32.gmra.mxu3 %vm70_vm0, %v56_v21  ;;  %v49_v20 = vld [vmem:[%s2479_s0 + $0xb8] sm:$0xff] }
  0x49   :  { %1334 = vmatmul.msk.f32.gmra.mxu0 %vm70_vm0, %v33_v23  ;;  %1358 = vmatmul.msk.f32.gmra.mxu3 %vm70_vm0, %v57_v24 }
  0x51   :  { %1335 = vmatmul.msk.f32.gmra.mxu0 %vm70_vm0, %v34_v25 }
  0x59   :  { %1336 = vmatmul.msk.f32.gmra.mxu0 %vm70_vm0, %v35_v27 }
  0x61   :  { %1337 = vmatmul.msk.f32.gmra.mxu0 %vm70_vm0, %v36_v28 }
  0x69   :  { %1338 = vmatmul.msk.f32.gmra.mxu0 %vm70_vm0, %v37_v30  ;;  %v627_v30 = vld [vmem:[%s2482_s5 + $0x8] sm:$0xff] }
  0x6a   :  { %1499 = vmatpush.msra.mxu3 %v627_v30  ;;  %743 = vmatpush.msra.mxu2 %v627_v30 }
  0x71   :  { %1339 = vmatmul.msk.f32.gmra.mxu0 %vm70_vm0, %v38_v31 }
  0x79   :  { %1340 = vmatmul.msk.f32.gmra.mxu0 %vm70_vm0, %v39_v33 }
  0x81   :  { %1341 = vmatmul.msk.f32.gmra.mxu0 %vm70_vm0, %v40_v34 }
  0x89   :  { %1342 = vmatmul.msk.f32.gmra.mxu0 %vm70_vm0, %v41_v35 }
  0x8e   :  { %v184_v37 = vpop.f32.mrf.mxu0 }
  0x8f   :  { %v185_v39 = vadd.f32 %v1807_v36, %v184_v37 }
  0x91   :  { %v1359_v40 = vclamps-f32 %v185_v39, 1.0  ;;  %1343 = vmatmul.msk.f32.gmra.mxu0 %vm70_vm0, %v42_v38 }
  0x93   :  { %1391 = vmatmul.msk.f32.vlgmr.msra.gmra.mxu1 %vm352_vm1, %v1359_v40 }
  0x94   :  { %v1815_v41 = vpop.f32.mrf.mxu3 }
  0x96   :  { %v187_v42 = vpop.f32.mrf.mxu0 }
  0x97   :  { %v188_v44 = vadd.f32 %v1807_v36, %v187_v42 }
  0x99   :  { %v1360_v45 = vclamps-f32 %v188_v44, 1.0  ;;  %1344 = vmatmul.msk.f32.gmra.mxu0 %vm70_vm0, %v43_v43 }
  0x9b   :  { %1392 = vmatmul.msk.f32.gmra.mxu1 %vm352_vm1, %v1360_v45  ;;  %v626_v45 = vld [vmem:[%s2482_s5] sm:$0xff] }
  0x9c   :  { %v259_v46 = vpop.f32.mrf.mxu3  ;;  %1500 = vmatpush.msra.mxu3 %v626_v45  ;;  %744 = vmatpush.msra.mxu2 %v626_v45 }
  0x9d   :  { %v260_v47 = vadd.f32 %v1807_v36, %v259_v46 }
  0x9e   :  { %v190_v48 = vpop.f32.mrf.mxu0 }
  0x9f   :  { %v1384_v50 = vclamps-f32 %v260_v47, 1.0  ;;  %v191_v51 = vadd.f32 %v1807_v36, %v190_v48 }
  0xa1   :  { %v1361_v52 = vclamps-f32 %v191_v51, 1.0  ;;  %1345 = vmatmul.msk.f32.gmra.mxu0 %vm70_vm0, %v44_v49  ;;  %1416 = vmatmul.msk.f32.vlgmr.msrb.gmra.mxu3 %vm352_vm1, %v1384_v50 }
  0xa3   :  { %1393 = vmatmul.msk.f32.gmra.mxu1 %vm352_vm1, %v1361_v52 }
  0xa4   :  { %v262_v53 = vpop.f32.mrf.mxu3 }
  0xa5   :  { %v263_v54 = vadd.f32 %v1807_v36, %v262_v53 }
  0xa6   :  { %v193_v55 = vpop.f32.mrf.mxu0 }
  0xa7   :  { %v1385_v57 = vclamps-f32 %v263_v54, 1.0  ;;  %v194_v58 = vadd.f32 %v1807_v36, %v193_v55  ;;  %v1898_v55 = vld [vmem:[%s2481_s4] ss:$0 sm:$0xff] }
  0xa9   :  { %v1362_v59 = vclamps-f32 %v194_v58, 1.0  ;;  %1346 = vmatmul.msk.f32.gmra.mxu0 %vm70_vm0, %v45_v56  ;;  %1417 = vmatmul.msk.f32.gmra.mxu3 %vm352_vm1, %v1385_v57 }
  0xab   :  { %1394 = vmatmul.msk.f32.gmra.mxu1 %vm352_vm1, %v1362_v59 }
  0xac   :  { %v265_v60 = vpop.f32.mrf.mxu3 }
  0xad   :  { %v266_v61 = vadd.f32 %v1807_v36, %v265_v60 }
  0xae   :  { %v196_v62 = vpop.f32.mrf.mxu0 }
  0xaf   :  { %v1386_v0 = vclamps-f32 %v266_v61, 1.0  ;;  %v197_v1 = vadd.f32 %v1807_v36, %v196_v62 }
  0xb1   :  { %v1363_v2 = vclamps-f32 %v197_v1, 1.0  ;;  %1347 = vmatmul.msk.f32.gmra.mxu0 %vm70_vm0, %v46_v63  ;;  %1418 = vmatmul.msk.f32.gmra.mxu3 %vm352_vm1, %v1386_v0 }
  0xb3   :  { %1395 = vmatmul.msk.f32.gmra.mxu1 %vm352_vm1, %v1363_v2 }
  0xb4   :  { %v268_v3 = vpop.f32.mrf.mxu3 }
  0xb5   :  { %v269_v4 = vadd.f32 %v1807_v36, %v268_v3 }
  0xb6   :  { %v199_v5 = vpop.f32.mrf.mxu0 }
  0xb7   :  { %v1387_v7 = vclamps-f32 %v269_v4, 1.0  ;;  %v200_v8 = vadd.f32 %v1807_v36, %v199_v5 }
  0xb9   :  { %v1364_v9 = vclamps-f32 %v200_v8, 1.0  ;;  %1348 = vmatmul.msk.f32.gmra.mxu0 %vm70_vm0, %v47_v6  ;;  %1419 = vmatmul.msk.f32.gmra.mxu3 %vm352_vm1, %v1387_v7 }
  0xbb   :  { %1396 = vmatmul.msk.f32.gmra.mxu1 %vm352_vm1, %v1364_v9 }
  0xbc   :  { %v271_v10 = vpop.f32.mrf.mxu3 }
  0xbd   :  { %v272_v11 = vadd.f32 %v1807_v36, %v271_v10 }
  0xbe   :  { %v202_v12 = vpop.f32.mrf.mxu0 }
  0xbf   :  { %v1388_v14 = vclamps-f32 %v272_v11, 1.0  ;;  %v203_v15 = vadd.f32 %v1807_v36, %v202_v12 }
  0xc1   :  { %v1365_v16 = vclamps-f32 %v203_v15, 1.0  ;;  %1349 = vmatmul.msk.f32.gmra.mxu0 %vm70_vm0, %v48_v13  ;;  %1420 = vmatmul.msk.f32.gmra.mxu3 %vm352_vm1, %v1388_v14 }
  0xc3   :  { %1397 = vmatmul.msk.f32.gmra.mxu1 %vm352_vm1, %v1365_v16 }
  0xc4   :  { %v274_v17 = vpop.f32.mrf.mxu3 }
  0xc5   :  { %v275_v18 = vadd.f32 %v1807_v36, %v274_v17 }
  0xc6   :  { %v205_v19 = vpop.f32.mrf.mxu0 }
  0xc7   :  { %v1389_v21 = vclamps-f32 %v275_v18, 1.0  ;;  %v206_v22 = vadd.f32 %v1807_v36, %v205_v19 }
  0xc9   :  { %v1366_v23 = vclamps-f32 %v206_v22, 1.0  ;;  %1350 = vmatmul.msk.f32.gmra.mxu0 %vm70_vm0, %v49_v20  ;;  %1421 = vmatmul.msk.f32.gmra.mxu3 %vm352_vm1, %v1389_v21 }
  0xcb   :  { %1398 = vmatmul.msk.f32.gmra.mxu1 %vm352_vm1, %v1366_v23 }
  0xcc   :  { %v277_v24 = vpop.f32.mrf.mxu3 }
  0xcd   :  { %v278_v25 = vadd.f32 %v1807_v36, %v277_v24 }
  0xce   :  { %v208_v26 = vpop.f32.mrf.mxu0 }
  0xcf   :  { %v1390_v27 = vclamps-f32 %v278_v25, 1.0  ;;  %v209_v28 = vadd.f32 %v1807_v36, %v208_v26 }
  0xd1   :  { %v1367_v29 = vclamps-f32 %v209_v28, 1.0  ;;  %1422 = vmatmul.msk.f32.gmra.mxu3 %vm352_vm1, %v1390_v27 }
  0xd3   :  { %1399 = vmatmul.msk.f32.gmra.mxu1 %vm352_vm1, %v1367_v29 }
  0xd6   :  { %v211_v31 = vpop.f32.mrf.mxu0 }
  0xd7   :  { %v212_v32 = vadd.f32 %v1807_v36, %v211_v31 }
  0xd9   :  { %v1368_v33 = vclamps-f32 %v212_v32, 1.0 }
  0xdb   :  { %1400 = vmatmul.msk.f32.gmra.mxu1 %vm352_vm1, %v1368_v33 }
  0xde   :  { %v214_v34 = vpop.f32.mrf.mxu0 }
  0xdf   :  { %v215_v35 = vadd.f32 %v1807_v36, %v214_v34 }
  0xe1   :  { %v1369_v37 = vclamps-f32 %v215_v35, 1.0 }
  0xe3   :  { %1401 = vmatmul.msk.f32.gmra.mxu1 %vm352_vm1, %v1369_v37 }
  0xe6   :  { %v217_v38 = vpop.f32.mrf.mxu0 }
  0xe7   :  { %v218_v39 = vadd.f32 %v1807_v36, %v217_v38 }
  0xe9   :  { %v1370_v40 = vclamps-f32 %v218_v39, 1.0 }
  0xeb   :  { %1402 = vmatmul.msk.f32.gmra.mxu1 %vm352_vm1, %v1370_v40 }
  0xee   :  { %v220_v42 = vpop.f32.mrf.mxu0 }
  0xef   :  { %v221_v43 = vadd.f32 %v1807_v36, %v220_v42 }
  0xf1   :  { %v1371_v44 = vclamps-f32 %v221_v43, 1.0 }
  0xf3   :  { %1403 = vmatmul.msk.f32.gmra.mxu1 %vm352_vm1, %v1371_v44 }
  0xf6   :  { %v223_v46 = vpop.f32.mrf.mxu0 }
  0xf7   :  { %v224_v47 = vadd.f32 %v1807_v36, %v223_v46 }
  0xf9   :  { %v1372_v48 = vclamps-f32 %v224_v47, 1.0 }
  0xfb   :  { %1404 = vmatmul.msk.f32.gmra.mxu1 %vm352_vm1, %v1372_v48 }
  0xfe   :  { %v226_v49 = vpop.f32.mrf.mxu0 }
  0xff   :  { %v227_v50 = vadd.f32 %v1807_v36, %v226_v49 }
 0x101   :  { %v1373_v51 = vclamps-f32 %v227_v50, 1.0 }
 0x103   :  { %1405 = vmatmul.msk.f32.gmra.mxu1 %vm352_vm1, %v1373_v51 }
 0x106   :  { %v229_v52 = vpop.f32.mrf.mxu0 }
 0x107   :  { %v230_v53 = vadd.f32 %v1807_v36, %v229_v52 }
 0x109   :  { %v1374_v54 = vclamps-f32 %v230_v53, 1.0 }
 0x10b   :  { %1406 = vmatmul.msk.f32.gmra.mxu1 %vm352_vm1, %v1374_v54 }
 0x10e   :  { %v232_v56 = vpop.f32.mrf.mxu0 }
 0x10f   :  { %v233_v57 = vadd.f32 %v1807_v36, %v232_v56 }
 0x110   :  { %v466_v58 = vpop.f32.mrf.mxu1 }
 0x111   :  { %v1375_v59 = vclamps-f32 %v233_v57, 1.0  ;;  %v467_v60 = vadd.f32 %v1898_v55, %v466_v58 }
 0x113   :  { %v1423_v61 = vclamps-f32 %v467_v60, 1.0  ;;  %1407 = vmatmul.msk.f32.gmra.mxu1 %vm352_vm1, %v1375_v59  ;;  %v257_v59 = vadd.f32 %v1807_v36, %v1815_v41 }
 0x115   :  { %1455 = vmatmul.msk.f32.vlgmr.msra.gmra.mxu2 %vm632_vm2, %v1423_v61 }
 0x116   :  { %v235_v62 = vpop.f32.mrf.mxu0 }
 0x117   :  { %v236_v63 = vadd.f32 %v1807_v36, %v235_v62 }
 0x118   :  { %v469_v0 = vpop.f32.mrf.mxu1 }
 0x119   :  { %v1376_v1 = vclamps-f32 %v236_v63, 1.0  ;;  %v470_v2 = vadd.f32 %v1898_v55, %v469_v0  ;;  %v1383_v63 = vclamps-f32 %v257_v59, 1.0 }
 0x11b   :  { %v1424_v3 = vclamps-f32 %v470_v2, 1.0  ;;  %1408 = vmatmul.msk.f32.gmra.mxu1 %vm352_vm1, %v1376_v1 }
 0x11d   :  { %1456 = vmatmul.msk.f32.gmra.mxu2 %vm632_vm2, %v1424_v3 }
 0x11e   :  { %v238_v4 = vpop.f32.mrf.mxu0 }
 0x11f   :  { %v239_v5 = vadd.f32 %v1807_v36, %v238_v4 }
 0x120   :  { %v472_v6 = vpop.f32.mrf.mxu1 }
 0x121   :  { %v1377_v7 = vclamps-f32 %v239_v5, 1.0  ;;  %v473_v8 = vadd.f32 %v1898_v55, %v472_v6 }
 0x123   :  { %v1425_v9 = vclamps-f32 %v473_v8, 1.0  ;;  %1409 = vmatmul.msk.f32.gmra.mxu1 %vm352_vm1, %v1377_v7 }
 0x124   :  { %v541_v10 = vpop.f32.mrf.mxu3 }
 0x125   :  { %v542_v11 = vadd.f32 %v1898_v55, %v541_v10  ;;  %1457 = vmatmul.msk.f32.gmra.mxu2 %vm632_vm2, %v1425_v9 }
 0x126   :  { %v241_v12 = vpop.f32.mrf.mxu0 }
 0x127   :  { %v1448_v13 = vclamps-f32 %v542_v11, 1.0  ;;  %v242_v14 = vadd.f32 %v1807_v36, %v241_v12 }
 0x128   :  { %v475_v15 = vpop.f32.mrf.mxu1 }
 0x129   :  { %v1378_v16 = vclamps-f32 %v242_v14, 1.0  ;;  %v476_v17 = vadd.f32 %v1898_v55, %v475_v15  ;;  %1480 = vmatmul.msk.f32.vlgmr.msra.gmra.mxu3 %vm632_vm2, %v1448_v13 }
 0x12b   :  { %v1426_v18 = vclamps-f32 %v476_v17, 1.0  ;;  %1410 = vmatmul.msk.f32.gmra.mxu1 %vm352_vm1, %v1378_v16 }
 0x12c   :  { %v544_v19 = vpop.f32.mrf.mxu3 }
 0x12d   :  { %v545_v20 = vadd.f32 %v1898_v55, %v544_v19  ;;  %1458 = vmatmul.msk.f32.gmra.mxu2 %vm632_vm2, %v1426_v18 }
 0x12e   :  { %v244_v21 = vpop.f32.mrf.mxu0 }
 0x12f   :  { %v1449_v22 = vclamps-f32 %v545_v20, 1.0  ;;  %v245_v23 = vadd.f32 %v1807_v36, %v244_v21 }
 0x130   :  { %v478_v24 = vpop.f32.mrf.mxu1 }
 0x131   :  { %v1379_v25 = vclamps-f32 %v245_v23, 1.0  ;;  %v479_v26 = vadd.f32 %v1898_v55, %v478_v24  ;;  %1481 = vmatmul.msk.f32.gmra.mxu3 %vm632_vm2, %v1449_v22 }
 0x133   :  { %v1427_v27 = vclamps-f32 %v479_v26, 1.0  ;;  %1411 = vmatmul.msk.f32.gmra.mxu1 %vm352_vm1, %v1379_v25 }
 0x134   :  { %v547_v28 = vpop.f32.mrf.mxu3 }
 0x135   :  { %v548_v29 = vadd.f32 %v1898_v55, %v547_v28  ;;  %1459 = vmatmul.msk.f32.gmra.mxu2 %vm632_vm2, %v1427_v27  ;;  %v1970_v27 = vld [vmem:[%s2483_s6] ss:$0 sm:$0xff] }
 0x136   :  { %v247_v30 = vpop.f32.mrf.mxu0 }
 0x137   :  { %v1450_v31 = vclamps-f32 %v548_v29, 1.0  ;;  %v248_v32 = vadd.f32 %v1807_v36, %v247_v30 }
 0x138   :  { %v481_v33 = vpop.f32.mrf.mxu1 }
 0x139   :  { %v1380_v34 = vclamps-f32 %v248_v32, 1.0  ;;  %v482_v35 = vadd.f32 %v1898_v55, %v481_v33  ;;  %1482 = vmatmul.msk.f32.gmra.mxu3 %vm632_vm2, %v1450_v31 }
 0x13b   :  { %v1428_v37 = vclamps-f32 %v482_v35, 1.0  ;;  %1412 = vmatmul.msk.f32.gmra.mxu1 %vm352_vm1, %v1380_v34 }
 0x13c   :  { %v550_v38 = vpop.f32.mrf.mxu3 }
 0x13d   :  { %v551_v39 = vadd.f32 %v1898_v55, %v550_v38  ;;  %1460 = vmatmul.msk.f32.gmra.mxu2 %vm632_vm2, %v1428_v37 }
 0x13e   :  { %v250_v40 = vpop.f32.mrf.mxu0 }
 0x13f   :  { %v1451_v42 = vclamps-f32 %v551_v39, 1.0  ;;  %v251_v43 = vadd.f32 %v1807_v36, %v250_v40 }
 0x140   :  { %v484_v44 = vpop.f32.mrf.mxu1 }
 0x141   :  { %v1381_v45 = vclamps-f32 %v251_v43, 1.0  ;;  %v485_v46 = vadd.f32 %v1898_v55, %v484_v44  ;;  %1483 = vmatmul.msk.f32.gmra.mxu3 %vm632_vm2, %v1451_v42 }
 0x143   :  { %v1429_v47 = vclamps-f32 %v485_v46, 1.0  ;;  %1413 = vmatmul.msk.f32.gmra.mxu1 %vm352_vm1, %v1381_v45 }
 0x144   :  { %v553_v48 = vpop.f32.mrf.mxu3 }
 0x145   :  { %v554_v49 = vadd.f32 %v1898_v55, %v553_v48  ;;  %1461 = vmatmul.msk.f32.gmra.mxu2 %vm632_vm2, %v1429_v47 }
 0x146   :  { %v253_v50 = vpop.f32.mrf.mxu0 }
 0x147   :  { %v1452_v51 = vclamps-f32 %v554_v49, 1.0  ;;  %v254_v52 = vadd.f32 %v1807_v36, %v253_v50 }
 0x148   :  { %v487_v53 = vpop.f32.mrf.mxu1 }
 0x149   :  { %v1382_v54 = vclamps-f32 %v254_v52, 1.0  ;;  %v488_v56 = vadd.f32 %v1898_v55, %v487_v53  ;;  %1484 = vmatmul.msk.f32.gmra.mxu3 %vm632_vm2, %v1452_v51 }
 0x14b   :  { %v1430_v57 = vclamps-f32 %v488_v56, 1.0  ;;  %1414 = vmatmul.msk.f32.gmra.mxu1 %vm352_vm1, %v1382_v54 }
 0x14c   :  { %v556_v58 = vpop.f32.mrf.mxu3 }
 0x14d   :  { %v557_v60 = vadd.f32 %v1898_v55, %v556_v58  ;;  %1462 = vmatmul.msk.f32.gmra.mxu2 %vm632_vm2, %v1430_v57 }
 0x14f   :  { %v1453_v61 = vclamps-f32 %v557_v60, 1.0 }
 0x150   :  { %v490_v62 = vpop.f32.mrf.mxu1 }
 0x151   :  { %v491_v0 = vadd.f32 %v1898_v55, %v490_v62  ;;  %1485 = vmatmul.msk.f32.gmra.mxu3 %vm632_vm2, %v1453_v61 }
 0x153   :  { %v1431_v1 = vclamps-f32 %v491_v0, 1.0  ;;  %1415 = vmatmul.msk.f32.gmra.mxu1 %vm352_vm1, %v1383_v63 }
 0x154   :  { %v559_v2 = vpop.f32.mrf.mxu3 }
 0x155   :  { %v560_v3 = vadd.f32 %v1898_v55, %v559_v2  ;;  %1463 = vmatmul.msk.f32.gmra.mxu2 %vm632_vm2, %v1431_v1 }
 0x157   :  { %v1454_v36 = vclamps-f32 %v560_v3, 1.0 }
 0x158   :  { %v493_v41 = vpop.f32.mrf.mxu1 }
 0x159   :  { %v494_v4 = vadd.f32 %v1898_v55, %v493_v41  ;;  %1486 = vmatmul.msk.f32.gmra.mxu3 %vm632_vm2, %v1454_v36 }
 0x15b   :  { %v1432_v5 = vclamps-f32 %v494_v4, 1.0 }
 0x15d   :  { %1464 = vmatmul.msk.f32.gmra.mxu2 %vm632_vm2, %v1432_v5 }
 0x160   :  { %v496_v6 = vpop.f32.mrf.mxu1 }
 0x161   :  { %v497_v7 = vadd.f32 %v1898_v55, %v496_v6 }
 0x163   :  { %v1433_v8 = vclamps-f32 %v497_v7, 1.0 }
 0x165   :  { %1465 = vmatmul.msk.f32.gmra.mxu2 %vm632_vm2, %v1433_v8 }
 0x168   :  { %v499_v9 = vpop.f32.mrf.mxu1 }
 0x169   :  { %v500_v10 = vadd.f32 %v1898_v55, %v499_v9 }
 0x16b   :  { %v1434_v11 = vclamps-f32 %v500_v10, 1.0 }
 0x16d   :  { %1466 = vmatmul.msk.f32.gmra.mxu2 %vm632_vm2, %v1434_v11 }
 0x170   :  { %v502_v12 = vpop.f32.mrf.mxu1 }
 0x171   :  { %v503_v13 = vadd.f32 %v1898_v55, %v502_v12 }
 0x173   :  { %v1435_v14 = vclamps-f32 %v503_v13, 1.0 }
 0x175   :  { %1467 = vmatmul.msk.f32.gmra.mxu2 %vm632_vm2, %v1435_v14 }
 0x178   :  { %v505_v15 = vpop.f32.mrf.mxu1 }
 0x179   :  { %v506_v16 = vadd.f32 %v1898_v55, %v505_v15 }
 0x17b   :  { %v1436_v17 = vclamps-f32 %v506_v16, 1.0 }
 0x17d   :  { %1468 = vmatmul.msk.f32.gmra.mxu2 %vm632_vm2, %v1436_v17 }
 0x180   :  { %v508_v18 = vpop.f32.mrf.mxu1 }
 0x181   :  { %v509_v19 = vadd.f32 %v1898_v55, %v508_v18 }
 0x183   :  { %v1437_v20 = vclamps-f32 %v509_v19, 1.0 }
 0x185   :  { %1469 = vmatmul.msk.f32.gmra.mxu2 %vm632_vm2, %v1437_v20 }
 0x188   :  { %v511_v21 = vpop.f32.mrf.mxu1 }
 0x189   :  { %v512_v22 = vadd.f32 %v1898_v55, %v511_v21 }
 0x18b   :  { %v1438_v23 = vclamps-f32 %v512_v22, 1.0 }
 0x18d   :  { %1470 = vmatmul.msk.f32.gmra.mxu2 %vm632_vm2, %v1438_v23 }
 0x190   :  { %v514_v24 = vpop.f32.mrf.mxu1 }
 0x191   :  { %v515_v25 = vadd.f32 %v1898_v55, %v514_v24 }
 0x193   :  { %v1439_v26 = vclamps-f32 %v515_v25, 1.0 }
 0x195   :  { %1471 = vmatmul.msk.f32.gmra.mxu2 %vm632_vm2, %v1439_v26 }
 0x198   :  { %v517_v28 = vpop.f32.mrf.mxu1  ;;  %v746_v29 = vpop.f32.mrf.mxu2 }
 0x199   :  { %v518_v30 = vadd.f32 %v1898_v55, %v517_v28  ;;  %v1974_v31 = vadd.f32 %v1970_v27, %v746_v29 }
 0x19b   :  { %v1440_v32 = vclamps-f32 %v518_v30, 1.0  ;;  %v843_v33 = vsel %vm842_vm3, %v1974_v31, -inf }
 0x19c   :  { %844 = vmax.xlane.f32.xlu0 %v843_v33 }
 0x19d   :  { %1472 = vmatmul.msk.f32.gmra.mxu2 %vm632_vm2, %v1440_v32 }
 0x1a0   :  { %v520_v34 = vpop.f32.mrf.mxu1  ;;  %v749_v35 = vpop.f32.mrf.mxu2 }
 0x1a1   :  { %v521_v37 = vadd.f32 %v1898_v55, %v520_v34  ;;  %v1981_v38 = vadd.f32 %v1970_v27, %v749_v35 }
 0x1a3   :  { %v1441_v39 = vclamps-f32 %v521_v37, 1.0  ;;  %v846_v40 = vsel %vm842_vm3, %v1981_v38, -inf }
 0x1a4   :  { %847 = vmax.xlane.f32.xlu0 %v846_v40 }
 0x1a5   :  { %1473 = vmatmul.msk.f32.gmra.mxu2 %vm632_vm2, %v1441_v39 }
 0x1a8   :  { %v523_v42 = vpop.f32.mrf.mxu1  ;;  %v752_v43 = vpop.f32.mrf.mxu2 }
 0x1a9   :  { %v524_v44 = vadd.f32 %v1898_v55, %v523_v42  ;;  %v1988_v45 = vadd.f32 %v1970_v27, %v752_v43 }
 0x1ab   :  { %v1442_v46 = vclamps-f32 %v524_v44, 1.0  ;;  %v849_v47 = vsel %vm842_vm3, %v1988_v45, -inf }
 0x1ac   :  { %v821_v48 = vpop.f32.mrf.mxu3  ;;  %850 = vmax.xlane.f32.xlu1 %v849_v47 }
 0x1ad   :  { %v1993_v49 = vadd.f32 %v1970_v27, %v821_v48  ;;  %1474 = vmatmul.msk.f32.gmra.mxu2 %vm632_vm2, %v1442_v46 }
 0x1af   :  { %v918_v53 = vsel %vm842_vm3, %v1993_v49, -inf }
 0x1b0   :  { %v526_v50 = vpop.f32.mrf.mxu1  ;;  %v755_v51 = vpop.f32.mrf.mxu2 }
 0x1b1   :  { %v527_v52 = vadd.f32 %v1898_v55, %v526_v50  ;;  %v2004_v58 = vadd.f32 %v1970_v27, %v755_v51 }
 0x1b3   :  { %v1443_v54 = vclamps-f32 %v527_v52, 1.0  ;;  %v852_v1 = vsel %vm842_vm3, %v2004_v58, -inf }
 0x1b4   :  { %v824_v56 = vpop.f32.mrf.mxu3  ;;  %919 = vmax.xlane.f32.xlu1 %v918_v53 }
 0x1b5   :  { %v2000_v57 = vadd.f32 %v1970_v27, %v824_v56  ;;  %1475 = vmatmul.msk.f32.gmra.mxu2 %vm632_vm2, %v1443_v54 }
 0x1b7   :  { %v921_v59 = vsel %vm842_vm3, %v2000_v57, -inf }
 0x1b8   :  { %922 = vmax.xlane.f32.xlu2 %v921_v59  ;;  %v529_v60 = vpop.f32.mrf.mxu1  ;;  %v758_v61 = vpop.f32.mrf.mxu2 }
 0x1b9   :  { %v530_v62 = vadd.f32 %v1898_v55, %v529_v60  ;;  %v2010_v0 = vadd.f32 %v1970_v27, %v758_v61 }
 0x1bb   :  { %v1444_v63 = vclamps-f32 %v530_v62, 1.0  ;;  %v855_v36 = vsel %vm842_vm3, %v2010_v0, -inf }
 0x1bc   :  { %v827_v2 = vpop.f32.mrf.mxu3  ;;  %853 = vmax.xlane.f32.xlu1 %v852_v1 }
 0x1bd   :  { %v2015_v3 = vadd.f32 %v1970_v27, %v827_v2  ;;  %1476 = vmatmul.msk.f32.gmra.mxu2 %vm632_vm2, %v1444_v63 }
 0x1bf   :  { %v924_v41 = vsel %vm842_vm3, %v2015_v3, -inf }
 0x1c0   :  { %v532_v4 = vpop.f32.mrf.mxu1  ;;  %v761_v5 = vpop.f32.mrf.mxu2  ;;  %856 = vmax.xlane.f32.xlu2 %v855_v36  ;;  %925 = vmax.xlane.f32.xlu0 %v924_v41 }
 0x1c1   :  { %v533_v6 = vadd.f32 %v1898_v55, %v532_v4  ;;  %v2024_v8 = vadd.f32 %v1970_v27, %v761_v5 }
 0x1c3   :  { %v1445_v7 = vclamps-f32 %v533_v6, 1.0  ;;  %v858_v11 = vsel %vm842_vm3, %v2024_v8, -inf }
 0x1c4   :  { %v830_v9 = vpop.f32.mrf.mxu3 }
 0x1c5   :  { %v2027_v10 = vadd.f32 %v1970_v27, %v830_v9  ;;  %1477 = vmatmul.msk.f32.gmra.mxu2 %vm632_vm2, %v1445_v7 }
 0x1c7   :  { %v927_v12 = vsel %vm842_vm3, %v2027_v10, -inf }
 0x1c8   :  { %v535_v13 = vpop.f32.mrf.mxu1  ;;  %v764_v14 = vpop.f32.mrf.mxu2  ;;  %859 = vmax.xlane.f32.xlu2 %v858_v11  ;;  %928 = vmax.xlane.f32.xlu1 %v927_v12 }
 0x1c9   :  { %v536_v15 = vadd.f32 %v1898_v55, %v535_v13  ;;  %v2036_v16 = vadd.f32 %v1970_v27, %v764_v14 }
 0x1cb   :  { %v1446_v17 = vclamps-f32 %v536_v15, 1.0  ;;  %v861_v18 = vsel %vm842_vm3, %v2036_v16, -inf }
 0x1cc   :  { %v833_v19 = vpop.f32.mrf.mxu3  ;;  %862 = vmax.xlane.f32.xlu0 %v861_v18 }
 0x1cd   :  { %v2041_v20 = vadd.f32 %v1970_v27, %v833_v19  ;;  %1478 = vmatmul.msk.f32.gmra.mxu2 %vm632_vm2, %v1446_v17 }
 0x1cf   :  { %v930_v21 = vsel %vm842_vm3, %v2041_v20, -inf }
 0x1d0   :  { %v538_v22 = vpop.f32.mrf.mxu1  ;;  %v767_v23 = vpop.f32.mrf.mxu2  ;;  %931 = vmax.xlane.f32.xlu2 %v930_v21 }
 0x1d1   :  { %v539_v24 = vadd.f32 %v1898_v55, %v538_v22  ;;  %v2048_v25 = vadd.f32 %v1970_v27, %v767_v23 }
 0x1d3   :  { %v1447_v26 = vclamps-f32 %v539_v24, 1.0  ;;  %v864_v28 = vsel %vm842_vm3, %v2048_v25, -inf }
 0x1d4   :  { %v836_v29 = vpop.f32.mrf.mxu3  ;;  %865 = vmax.xlane.f32.xlu1 %v864_v28 }
 0x1d5   :  { %v2053_v30 = vadd.f32 %v1970_v27, %v836_v29  ;;  %1479 = vmatmul.msk.f32.gmra.mxu2 %vm632_vm2, %v1447_v26 }
 0x1d7   :  { %v933_v32 = vsel %vm842_vm3, %v2053_v30, -inf }
 0x1d8   :  { %v770_v33 = vpop.f32.mrf.mxu2  ;;  %934 = vmax.xlane.f32.xlu0 %v933_v32 }
 0x1d9   :  { %v2059_v55 = vadd.f32 %v1970_v27, %v770_v33 }
 0x1db   :  { %v867_v34 = vsel %vm842_vm3, %v2059_v55, -inf }
 0x1dc   :  { %v839_v35 = vpop.f32.mrf.mxu3  ;;  %868 = vmax.xlane.f32.xlu2 %v867_v34 }
 0x1dd   :  { %v2064_v37 = vadd.f32 %v1970_v27, %v839_v35 }
 0x1df   :  { %v936_v39 = vsel %vm842_vm3, %v2064_v37, -inf }
 0x1e0   :  { %v773_v40 = vpop.f32.mrf.mxu2  ;;  %937 = vmax.xlane.f32.xlu1 %v936_v39 }
 0x1e1   :  { %v2069_v42 = vadd.f32 %v1970_v27, %v773_v40 }
 0x1e3   :  { %v870_v43 = vsel %vm842_vm3, %v2069_v42, -inf }
 0x1e4   :  { %871 = vmax.xlane.f32.xlu0 %v870_v43 }
 0x1e8   :  { %v776_v44 = vpop.f32.mrf.mxu2 }
 0x1e9   :  { %v2074_v46 = vadd.f32 %v1970_v27, %v776_v44 }
 0x1eb   :  { %v873_v47 = vsel %vm842_vm3, %v2074_v46, -inf }
 0x1ec   :  { %874 = vmax.xlane.f32.xlu1 %v873_v47 }
 0x1f0   :  { %v779_v48 = vpop.f32.mrf.mxu2 }
 0x1f1   :  { %v2079_v50 = vadd.f32 %v1970_v27, %v779_v48 }
 0x1f3   :  { %v876_v51 = vsel %vm842_vm3, %v2079_v50, -inf }
 0x1f4   :  { %877 = vmax.xlane.f32.xlu2 %v876_v51 }
 0x1f8   :  { %v782_v52 = vpop.f32.mrf.mxu2 }
 0x1f9   :  { %v2084_v53 = vadd.f32 %v1970_v27, %v782_v52 }
 0x1fb   :  { %v879_v54 = vsel %vm842_vm3, %v2084_v53, -inf }
 0x1fc   :  { %880 = vmax.xlane.f32.xlu0 %v879_v54 }
 0x200   :  { %v785_v56 = vpop.f32.mrf.mxu2 }
 0x201   :  { %v2089_v59 = vadd.f32 %v1970_v27, %v785_v56 }
 0x203   :  { %v882_v60 = vsel %vm842_vm3, %v2089_v59, -inf }
 0x204   :  { %883 = vmax.xlane.f32.xlu1 %v882_v60 }
 0x208   :  { %v788_v61 = vpop.f32.mrf.mxu2 }
 0x209   :  { %v2094_v62 = vadd.f32 %v1970_v27, %v788_v61 }
 0x20b   :  { %v885_v63 = vsel %vm842_vm3, %v2094_v62, -inf }
 0x20c   :  { %886 = vmax.xlane.f32.xlu2 %v885_v63 }
 0x20f   :  { %v845_v1 = vpop.xlane.xlu0 %844 }
 0x210   :  { %v939_v2 = vsub.f32 %v1974_v31, %v845_v1  ;;  %v791_v36 = vpop.f32.mrf.mxu2 }
 0x211   :  { %v2100_v41 = vadd.f32 %v1970_v27, %v791_v36 }
 0x212   :  { %v971_v4 = vmul.f32 1.442695, %v939_v2 }
 0x213   :  { %v888_v5 = vsel %vm842_vm3, %v2100_v41, -inf }
 0x214   :  { %1504 = vpow2.f32 %v971_v4  ;;  %889 = vmax.xlane.f32.xlu0 %v888_v5 }
 0x217   :  { %v848_v6 = vpop.xlane.xlu0 %847 }
 0x218   :  { %v940_v7 = vsub.f32 %v1981_v38, %v848_v6  ;;  %v794_v9 = vpop.f32.mrf.mxu2 }
 0x219   :  { %v2106_v11 = vadd.f32 %v1970_v27, %v794_v9 }
 0x21a   :  { %v2108_v12 = vpop.eup %1504  ;;  %v973_v31 = vmul.f32 1.442695, %v940_v7 }
 0x21b   :  { %v891_v13 = vsel %vm842_vm3, %v2106_v11, -inf  ;;  %v1035_v14 = vsel %vm842_vm3, %v2108_v12, 0.0 }
 0x21c   :  { %1506 = vpow2.f32 %v973_v31  ;;  %892 = vmax.xlane.f32.xlu1 %v891_v13  ;;  %1036 = vadd.xlane.f32.xlu2 %v1035_v14 }
 0x21f   :  { %v851_v15 = vpop.xlane.xlu1 %850 }
 0x220   :  { %v941_v17 = vsub.f32 %v1988_v45, %v851_v15  ;;  %v797_v38 = vpop.f32.mrf.mxu2 }
 0x221   :  { %v2116_v18 = vadd.f32 %v1970_v27, %v797_v38 }
 0x222   :  { %v2118_v19 = vpop.eup %1506  ;;  %v975_v21 = vmul.f32 1.442695, %v941_v17 }
 0x223   :  { %v894_v22 = vsel %vm842_vm3, %v2116_v18, -inf  ;;  %v1038_v23 = vsel %vm842_vm3, %v2118_v19, 0.0 }
 0x224   :  { %1508 = vpow2.f32 %v975_v21  ;;  %895 = vmax.xlane.f32.xlu2 %v894_v22  ;;  %1039 = vadd.xlane.f32.xlu0 %v1038_v23 }
 0x227   :  { %v920_v24 = vpop.xlane.xlu1 %919 }
 0x228   :  { %v964_v26 = vsub.f32 %v1993_v49, %v920_v24  ;;  %v800_v45 = vpop.f32.mrf.mxu2 }
 0x229   :  { %v2126_v28 = vadd.f32 %v1970_v27, %v800_v45 }
 0x22a   :  { %v2128_v29 = vpop.eup %1508  ;;  %v1021_v32 = vmul.f32 1.442695, %v964_v26 }
 0x22b   :  { %v923_v33 = vpop.xlane.xlu2 %922  ;;  %v1041_v34 = vsel %vm842_vm3, %v2128_v29, 0.0  ;;  %v897_v35 = vsel %vm842_vm3, %v2126_v28, -inf }
 0x22c   :  { %1510 = vpow2.f32 %v1021_v32  ;;  %v965_v39 = vsub.f32 %v2000_v57, %v923_v33  ;;  %1042 = vadd.xlane.f32.xlu1 %v1041_v34  ;;  %898 = vmax.xlane.f32.xlu0 %v897_v35 }
 0x22e   :  { %v1023_v49 = vmul.f32 1.442695, %v965_v39 }
 0x22f   :  { %v854_v40 = vpop.xlane.xlu1 %853 }
 0x230   :  { %v942_v43 = vsub.f32 %v2004_v58, %v854_v40  ;;  %v803_v44 = vpop.f32.mrf.mxu2  ;;  %1512 = vpow2.f32 %v1023_v49 }
 0x231   :  { %v2137_v47 = vadd.f32 %v1970_v27, %v803_v44 }
 0x232   :  { %v2139_v48 = vpop.eup %1510  ;;  %v977_v51 = vmul.f32 1.442695, %v942_v43 }
 0x233   :  { %v857_v52 = vpop.xlane.xlu2 %856  ;;  %v900_v54 = vsel %vm842_vm3, %v2137_v47, -inf  ;;  %v1110_v57 = vsel %vm842_vm3, %v2139_v48, 0.0  ;;  %v926_v60 = vpop.xlane.xlu0 %925 }
 0x234   :  { %1514 = vpow2.f32 %v977_v51  ;;  %v943_v56 = vsub.f32 %v2010_v0, %v857_v52  ;;  %901 = vmax.xlane.f32.xlu1 %v900_v54  ;;  %1111 = vadd.xlane.f32.xlu0 %v1110_v57  ;;  %v966_v2 = vsub.f32 %v2015_v3, %v926_v60 }
 0x236   :  { %v979_v58 = vmul.f32 1.442695, %v943_v56  ;;  %v2146_v61 = vpop.eup %1512  ;;  %v1025_v7 = vmul.f32 1.442695, %v966_v2 }
 0x237   :  { %v1113_v4 = vsel %vm842_vm3, %v2146_v61, 0.0 }
 0x238   :  { %1516 = vpow2.f32 %v979_v58  ;;  %v806_v63 = vpop.f32.mrf.mxu2 }
 0x239   :  { %v2159_v31 = vadd.f32 %v1970_v27, %v806_v63 }
 0x23a   :  { %v2148_v1 = vpop.eup %1514 }
 0x23b   :  { %v860_v36 = vpop.xlane.xlu2 %859  ;;  %v1044_v5 = vsel %vm842_vm3, %v2148_v1, 0.0  ;;  %v929_v13 = vpop.xlane.xlu1 %928  ;;  %v903_v38 = vsel %vm842_vm3, %v2159_v31, -inf }
 0x23c   :  { %v944_v0 = vsub.f32 %v2024_v8, %v860_v36  ;;  %1114 = vadd.xlane.f32.xlu1 %v1113_v4  ;;  %1045 = vadd.xlane.f32.xlu2 %v1044_v5  ;;  %v967_v54 = vsub.f32 %v2027_v10, %v929_v13 }
 0x23e   :  { %v2156_v6 = vpop.eup %1516  ;;  %v981_v9 = vmul.f32 1.442695, %v944_v0  ;;  %v1027_v60 = vmul.f32 1.442695, %v967_v54 }
 0x23f   :  { %v863_v3 = vpop.xlane.xlu0 %862  ;;  %v1047_v14 = vsel %vm842_vm3, %v2156_v6, 0.0 }
 0x240   :  { %1518 = vpow2.f32 %v981_v9  ;;  %v809_v15 = vpop.f32.mrf.mxu2  ;;  %1048 = vadd.xlane.f32.xlu0 %v1047_v14  ;;  %v945_v8 = vsub.f32 %v2036_v16, %v863_v3 }
 0x241   :  { %1520 = vpow2.f32 %v1025_v7  ;;  %v2165_v17 = vadd.f32 %v1970_v27, %v809_v15 }
 0x242   :  { %v983_v22 = vmul.f32 1.442695, %v945_v8 }
 0x243   :  { %v2171_v23 = vpop.xlane.xlu2 %931  ;;  %v906_v45 = vsel %vm842_vm3, %v2165_v17, -inf }
 0x244   :  { %904 = vmax.xlane.f32.xlu2 %v903_v38  ;;  %1522 = vpow2.f32 %v983_v22 }
 0x246   :  { %v2169_v21 = vpop.eup %1518 }
 0x247   :  { %v866_v24 = vpop.xlane.xlu1 %865  ;;  %v1050_v26 = vsel %vm842_vm3, %v2169_v21, 0.0  ;;  %v2177_v16 = vpop.eup %1520 }
 0x248   :  { %v946_v32 = vsub.f32 %v2048_v25, %v866_v24  ;;  %v812_v33 = vpop.f32.mrf.mxu2  ;;  %1051 = vadd.xlane.f32.xlu1 %v1050_v26  ;;  %907 = vmax.xlane.f32.xlu0 %v906_v45  ;;  %v1116_v39 = vsel %vm842_vm3, %v2177_v16, 0.0 }
 0x249   :  { %v2181_v35 = vadd.f32 %v1970_v27, %v812_v33 }
 0x24a   :  { %v985_v34 = vmul.f32 1.442695, %v946_v32  ;;  %v2189_v25 = vpop.eup %1522 }
 0x24b   :  { %v2185_v49 = vpop.xlane.xlu0 %934  ;;  %v909_v43 = vsel %vm842_vm3, %v2181_v35, -inf  ;;  %v1053_v58 = vsel %vm842_vm3, %v2189_v25, 0.0 }
 0x24c   :  { %1524 = vpow2.f32 %v985_v34  ;;  %1117 = vadd.xlane.f32.xlu2 %v1116_v39 }
 0x24f   :  { %v869_v40 = vpop.xlane.xlu2 %868 }
 0x250   :  { %v947_v44 = vsub.f32 %v2059_v55, %v869_v40  ;;  %v815_v51 = vpop.f32.mrf.mxu2  ;;  %910 = vmax.xlane.f32.xlu1 %v909_v43 }
 0x251   :  { %v2202_v2 = vadd.f32 %v1970_v27, %v815_v51 }
 0x252   :  { %v2192_v52 = vpop.eup %1524  ;;  %v987_v57 = vmul.f32 1.442695, %v947_v44 }
 0x253   :  { %v1056_v56 = vsel %vm842_vm3, %v2192_v52, 0.0  ;;  %v2199_v63 = vpop.xlane.xlu1 %937 }
 0x254   :  { %1526 = vpow2.f32 %v987_v57  ;;  %1057 = vadd.xlane.f32.xlu0 %v1056_v56  ;;  %1054 = vadd.xlane.f32.xlu2 %v1053_v58 }
 0x255   :  { %1528 = vpow2.f32 %v1027_v60 }
 0x257   :  { %v872_v55 = vpop.xlane.xlu0 %871 }
 0x258   :  { %v948_v36 = vsub.f32 %v2069_v42, %v872_v55  ;;  %v818_v10 = vpop.f32.mrf.mxu2  ;;  %v912_v42 = vsel %vm842_vm3, %v2202_v2, -inf }
 0x259   :  { %v2206_v4 = vadd.f32 %v1970_v27, %v818_v10 }
 0x25a   :  { %v2208_v5 = vpop.eup %1526  ;;  %v989_v0 = vmul.f32 1.442695, %v948_v36 }
 0x25b   :  { %v1059_v7 = vsel %vm842_vm3, %v2208_v5, 0.0  ;;  %v915_v9 = vsel %vm842_vm3, %v2206_v4, -inf  ;;  %v2216_v27 = vpop.eup %1528 }
 0x25c   :  { %1530 = vpow2.f32 %v989_v0  ;;  %1060 = vadd.xlane.f32.xlu1 %v1059_v7  ;;  %916 = vmax.xlane.f32.xlu0 %v915_v9  ;;  %v1119_v8 = vsel %vm842_vm3, %v2216_v27, 0.0 }
 0x25d   :  { %913 = vmax.xlane.f32.xlu2 %v912_v42 }
 0x25f   :  { %v875_v13 = vpop.xlane.xlu1 %874 }
 0x260   :  { %v949_v3 = vsub.f32 %v2074_v46, %v875_v13 }
 0x262   :  { %v2219_v14 = vpop.eup %1530  ;;  %v991_v15 = vmul.f32 1.442695, %v949_v3 }
 0x263   :  { %v1062_v38 = vsel %vm842_vm3, %v2219_v14, 0.0 }
 0x264   :  { %1532 = vpow2.f32 %v991_v15  ;;  %1120 = vadd.xlane.f32.xlu0 %v1119_v8 }
 0x265   :  { %1063 = vadd.xlane.f32.xlu2 %v1062_v38 }
 0x267   :  { %v878_v22 = vpop.xlane.xlu2 %877 }
 0x268   :  { %v950_v24 = vsub.f32 %v2079_v50, %v878_v22 }
 0x26a   :  { %v2226_v26 = vpop.eup %1532  ;;  %v993_v45 = vmul.f32 1.442695, %v950_v24 }
 0x26b   :  { %v1065_v46 = vsel %vm842_vm3, %v2226_v26, 0.0 }
 0x26c   :  { %1534 = vpow2.f32 %v993_v45  ;;  %1066 = vadd.xlane.f32.xlu0 %v1065_v46 }
 0x26f   :  { %v881_v32 = vpop.xlane.xlu0 %880 }
 0x270   :  { %v951_v33 = vsub.f32 %v2084_v53, %v881_v32 }
 0x272   :  { %v2231_v34 = vpop.eup %1534  ;;  %v995_v39 = vmul.f32 1.442695, %v951_v33 }
 0x273   :  { %v1068_v40 = vsel %vm842_vm3, %v2231_v34, 0.0 }
 0x274   :  { %1536 = vpow2.f32 %v995_v39  ;;  %1069 = vadd.xlane.f32.xlu1 %v1068_v40 }
 0x277   :  { %v884_v50 = vpop.xlane.xlu1 %883 }
 0x278   :  { %v952_v43 = vsub.f32 %v2089_v59, %v884_v50 }
 0x27a   :  { %v2236_v44 = vpop.eup %1536  ;;  %v997_v51 = vmul.f32 1.442695, %v952_v43 }
 0x27b   :  { %v1071_v54 = vsel %vm842_vm3, %v2236_v44, 0.0 }
 0x27c   :  { %1538 = vpow2.f32 %v997_v51  ;;  %1072 = vadd.xlane.f32.xlu2 %v1071_v54 }
 0x27f   :  { %v887_v53 = vpop.xlane.xlu2 %886 }
 0x280   :  { %v953_v57 = vsub.f32 %v2094_v62, %v887_v53 }
 0x282   :  { %v2241_v56 = vpop.eup %1538  ;;  %v999_v58 = vmul.f32 1.442695, %v953_v57 }
 0x283   :  { %v1074_v60 = vsel %vm842_vm3, %v2241_v56, 0.0 }
 0x284   :  { %1540 = vpow2.f32 %v999_v58  ;;  %1075 = vadd.xlane.f32.xlu0 %v1074_v60 }
 0x287   :  { %v890_v59 = vpop.xlane.xlu0 %889 }
 0x288   :  { %v954_v55 = vsub.f32 %v2100_v41, %v890_v59 }
 0x28a   :  { %v2246_v36 = vpop.eup %1540  ;;  %v1001_v10 = vmul.f32 1.442695, %v954_v55 }
 0x28b   :  { %v1077_v0 = vsel %vm842_vm3, %v2246_v36, 0.0 }
 0x28c   :  { %1542 = vpow2.f32 %v1001_v10  ;;  %1078 = vadd.xlane.f32.xlu1 %v1077_v0 }
 0x28f   :  { %v893_v62 = vpop.xlane.xlu1 %892  ;;  %v1037_v7 = vpop.xlane.xlu2 %1036 }
 0x290   :  { %v955_v9 = vsub.f32 %v2106_v11, %v893_v62  ;;  %1544 = vrcp.f32 %v1037_v7 }
 0x292   :  { %v2251_v42 = vpop.eup %1542  ;;  %v1003_v13 = vmul.f32 1.442695, %v955_v9 }
 0x293   :  { %v1080_v3 = vsel %vm842_vm3, %v2251_v42, 0.0 }
 0x294   :  { %1546 = vpow2.f32 %v1003_v13  ;;  %1081 = vadd.xlane.f32.xlu2 %v1080_v3 }
 0x296   :  { %v1545_v41 = vpop.eup %1544 }
 0x297   :  { %v1163_v15 = vmul.f32 %v1545_v41, %v1037_v7  ;;  %v896_v8 = vpop.xlane.xlu2 %895  ;;  %v1040_v38 = vpop.xlane.xlu0 %1039 }
 0x298   :  { %v956_v22 = vsub.f32 %v2116_v18, %v896_v8  ;;  %1548 = vrcp.f32 %v1040_v38 }
 0x299   :  { %v1195_v24 = vsub.f32 2.0, %v1163_v15 }
 0x29a   :  { %v2256_v45 = vpop.eup %1546  ;;  %v1005_v11 = vmul.f32 1.442695, %v956_v22 }
 0x29b   :  { %v1227_v46 = vmul.f32 %v1545_v41, %v1195_v24  ;;  %v1083_v32 = vsel %vm842_vm3, %v2256_v45, 0.0 }
 0x29c   :  { %1550 = vpow2.f32 %v1005_v11  ;;  %1084 = vadd.xlane.f32.xlu0 %v1083_v32 }
 0x29d   :  { %v1259_v33 = vmul.f32 %v2108_v12, %v1227_v46 }
 0x29e   :  { %v1549_v39 = vpop.eup %1548 }
 0x29f   :  { %1291 = vst.msk [vmem:[%s2484_s7] sm:$0xff] %vm842_vm3, %v1259_v33  ;;  %v1164_v18 = vmul.f32 %v1549_v39, %v1040_v38  ;;  %v1043_v40 = vpop.xlane.xlu1 %1042  ;;  %v899_v50 = vpop.xlane.xlu0 %898 }
 0x2a0   :  { %1552 = vrcp.f32 %v1043_v40  ;;  %v957_v43 = vsub.f32 %v2126_v28, %v899_v50 }
 0x2a1   :  { %v1196_v51 = vsub.f32 2.0, %v1164_v18 }
 0x2a2   :  { %v2266_v54 = vpop.eup %1550  ;;  %v1007_v53 = vmul.f32 1.442695, %v957_v43 }
 0x2a3   :  { %v1228_v57 = vmul.f32 %v1549_v39, %v1196_v51  ;;  %v1086_v12 = vsel %vm842_vm3, %v2266_v54, 0.0 }
 0x2a4   :  { %1554 = vpow2.f32 %v1007_v53  ;;  %1087 = vadd.xlane.f32.xlu1 %v1086_v12 }
 0x2a5   :  { %v1260_v58 = vmul.f32 %v2118_v19, %v1228_v57 }
 0x2a6   :  { %v1553_v60 = vpop.eup %1552 }
 0x2a7   :  { %1292 = vst.msk [vmem:[%s2484_s7 + $0x8] sm:$0xff] %vm842_vm3, %v1260_v58  ;;  %v1165_v59 = vmul.f32 %v1553_v60, %v1043_v40  ;;  %v902_v28 = vpop.xlane.xlu1 %901  ;;  %v1112_v55 = vpop.xlane.xlu0 %1111 }
 0x2a8   :  { %v958_v10 = vsub.f32 %v2137_v47, %v902_v28  ;;  %1556 = vrcp.f32 %v1112_v55 }
 0x2a9   :  { %v1197_v0 = vsub.f32 2.0, %v1165_v59 }
 0x2aa   :  { %v2276_v62 = vpop.eup %1554  ;;  %v1009_v7 = vmul.f32 1.442695, %v958_v10 }
 0x2ab   :  { %v1229_v9 = vmul.f32 %v1553_v60, %v1197_v0  ;;  %v1089_v19 = vsel %vm842_vm3, %v2276_v62, 0.0 }
 0x2ac   :  { %1558 = vpow2.f32 %v1009_v7  ;;  %1090 = vadd.xlane.f32.xlu2 %v1089_v19 }
 0x2ad   :  { %v1261_v13 = vmul.f32 %v2128_v29, %v1229_v9 }
 0x2ae   :  { %v1557_v3 = vpop.eup %1556 }
 0x2af   :  { %1293 = vst.msk [vmem:[%s2484_s7 + $0x10] sm:$0xff] %vm842_vm3, %v1261_v13  ;;  %v1188_v47 = vmul.f32 %v1557_v3, %v1112_v55  ;;  %v1115_v41 = vpop.xlane.xlu1 %1114  ;;  %v1046_v15 = vpop.xlane.xlu2 %1045 }
 0x2b0   :  { %1560 = vrcp.f32 %v1115_v41 }
 0x2b1   :  { %v1220_v8 = vsub.f32 2.0, %v1188_v47  ;;  %1562 = vrcp.f32 %v1046_v15 }
 0x2b2   :  { %v2285_v38 = vpop.eup %1558 }
 0x2b3   :  { %v1252_v22 = vmul.f32 %v1557_v3, %v1220_v8  ;;  %v1049_v24 = vpop.xlane.xlu0 %1048  ;;  %v1092_v11 = vsel %vm842_vm3, %v2285_v38, 0.0 }
 0x2b4   :  { %1564 = vrcp.f32 %v1049_v24  ;;  %1093 = vadd.xlane.f32.xlu0 %v1092_v11 }
 0x2b5   :  { %v1284_v29 = vmul.f32 %v2139_v48, %v1252_v22 }
 0x2b6   :  { %v1561_v46 = vpop.eup %1560 }
 0x2b7   :  { %v1563_v32 = vpop.eup %1562  ;;  %1316 = vst.msk [vmem:[%s2484_s7 + $0xc8] sm:$0xff] %vm842_vm3, %v1284_v29  ;;  %v1189_v33 = vmul.f32 %v1561_v46, %v1115_v41  ;;  %v905_v39 = vpop.xlane.xlu2 %904 }
 0x2b8   :  { %v1166_v18 = vmul.f32 %v1563_v32, %v1046_v15  ;;  %v959_v40 = vsub.f32 %v2159_v31, %v905_v39 }
 0x2b9   :  { %v1221_v50 = vsub.f32 2.0, %v1189_v33 }
 0x2ba   :  { %v1565_v43 = vpop.eup %1564  ;;  %v1198_v51 = vsub.f32 2.0, %v1166_v18  ;;  %v1011_v53 = vmul.f32 1.442695, %v959_v40 }
 0x2bb   :  { %v1253_v57 = vmul.f32 %v1561_v46, %v1221_v50  ;;  %v1167_v12 = vmul.f32 %v1565_v43, %v1049_v24  ;;  %v1052_v58 = vpop.xlane.xlu1 %1051  ;;  %v908_v48 = vpop.xlane.xlu0 %907 }
 0x2bc   :  { %v1230_v60 = vmul.f32 %v1563_v32, %v1198_v51  ;;  %1566 = vpow2.f32 %v1011_v53  ;;  %v960_v59 = vsub.f32 %v2165_v17, %v908_v48 }
 0x2bd   :  { %v1285_v28 = vmul.f32 %v2146_v61, %v1253_v57  ;;  %v1199_v55 = vsub.f32 2.0, %v1167_v12  ;;  %1568 = vrcp.f32 %v1052_v58 }
 0x2be   :  { %v1262_v10 = vmul.f32 %v2148_v1, %v1230_v60  ;;  %v1013_v0 = vmul.f32 1.442695, %v960_v59  ;;  %v968_v59 = vsub.f32 %v2041_v20, %v2171_v23 }
 0x2bf   :  { %1317 = vst.msk [vmem:[%s2484_s7 + $0xd0] sm:$0xff] %vm842_vm3, %v1285_v28  ;;  %v1231_v31 = vmul.f32 %v1565_v43, %v1199_v55  ;;  %v1118_v7 = vpop.xlane.xlu2 %1117 }
 0x2c0   :  { %1294 = vst.msk [vmem:[%s2484_s7 + $0x18] sm:$0xff] %vm842_vm3, %v1262_v10  ;;  %1570 = vpow2.f32 %v1013_v0 }
 0x2c1   :  { %v1263_v61 = vmul.f32 %v2156_v6, %v1231_v31  ;;  %1572 = vrcp.f32 %v1118_v7  ;;  %v970_v6 = vsub.f32 %v2064_v37, %v2199_v63 }
 0x2c2   :  { %v2307_v17 = vpop.eup %1566 }
 0x2c3   :  { %v1569_v1 = vpop.eup %1568  ;;  %1295 = vst.msk [vmem:[%s2484_s7 + $0x20] sm:$0xff] %vm842_vm3, %v1263_v61  ;;  %v911_v9 = vpop.xlane.xlu1 %910  ;;  %v1095_v19 = vsel %vm842_vm3, %v2307_v17, 0.0  ;;  %v1029_v61 = vmul.f32 1.442695, %v968_v59 }
 0x2c4   :  { %v1168_v13 = vmul.f32 %v1569_v1, %v1052_v58  ;;  %v961_v3 = vsub.f32 %v2181_v35, %v911_v9  ;;  %1096 = vadd.xlane.f32.xlu1 %v1095_v19  ;;  %v1033_v35 = vmul.f32 1.442695, %v970_v6  ;;  %v969_v58 = vsub.f32 %v2053_v30, %v2185_v49 }
 0x2c6   :  { %v2316_v47 = vpop.eup %1570  ;;  %v1200_v41 = vsub.f32 2.0, %v1168_v13  ;;  %v1015_v15 = vmul.f32 1.442695, %v961_v3 }
 0x2c7   :  { %v1573_v8 = vpop.eup %1572  ;;  %v1055_v22 = vpop.xlane.xlu2 %1054  ;;  %v1098_v11 = vsel %vm842_vm3, %v2316_v47, 0.0 }
 0x2c8   :  { %v1058_v24 = vpop.xlane.xlu0 %1057  ;;  %v1232_v29 = vmul.f32 %v1569_v1, %v1200_v41  ;;  %v1190_v46 = vmul.f32 %v1573_v8, %v1118_v7  ;;  %1574 = vpow2.f32 %v1015_v15  ;;  %1099 = vadd.xlane.f32.xlu2 %v1098_v11  ;;  %v1031_v7 = vmul.f32 1.442695, %v969_v58 }
 0x2c9   :  { %1576 = vrcp.f32 %v1055_v22 }
 0x2ca   :  { %v1264_v32 = vmul.f32 %v2169_v21, %v1232_v29  ;;  %v1222_v33 = vsub.f32 2.0, %v1190_v46  ;;  %1578 = vrcp.f32 %v1058_v24 }
 0x2cb   :  { %1580 = vpow2.f32 %v1033_v35 }
 0x2cc   :  { %1296 = vst.msk [vmem:[%s2484_s7 + $0x28] sm:$0xff] %vm842_vm3, %v1264_v32  ;;  %v1254_v37 = vmul.f32 %v1573_v8, %v1222_v33 }
 0x2ce   :  { %v2327_v63 = vpop.eup %1574  ;;  %v1286_v39 = vmul.f32 %v2177_v16, %v1254_v37 }
 0x2cf   :  { %v1577_v18 = vpop.eup %1576  ;;  %v1061_v40 = vpop.xlane.xlu1 %1060  ;;  %v1101_v43 = vsel %vm842_vm3, %v2327_v63, 0.0 }
 0x2d0   :  { %v917_v50 = vpop.xlane.xlu0 %916  ;;  %v1579_v21 = vpop.eup %1578  ;;  %1318 = vst.msk [vmem:[%s2484_s7 + $0xd8] sm:$0xff] %vm842_vm3, %v1286_v39  ;;  %v1169_v51 = vmul.f32 %v1577_v18, %v1055_v22  ;;  %1582 = vrcp.f32 %v1061_v40  ;;  %1102 = vadd.xlane.f32.xlu0 %v1101_v43 }
 0x2d1   :  { %v914_v53 = vpop.xlane.xlu2 %913  ;;  %v963_v57 = vsub.f32 %v2206_v4, %v917_v50  ;;  %v1170_v12 = vmul.f32 %v1579_v21, %v1058_v24  ;;  %v2342_v10 = vpop.eup %1580 }
 0x2d2   :  { %v962_v16 = vsub.f32 %v2202_v2, %v914_v53  ;;  %v1201_v48 = vsub.f32 2.0, %v1169_v51  ;;  %v1128_v20 = vsel %vm842_vm3, %v2342_v10, 0.0 }
 0x2d3   :  { %v1019_v60 = vmul.f32 1.442695, %v963_v57  ;;  %v1202_v28 = vsub.f32 2.0, %v1170_v12 }
 0x2d4   :  { %v1017_v55 = vmul.f32 1.442695, %v962_v16  ;;  %v1233_v0 = vmul.f32 %v1577_v18, %v1201_v48 }
 0x2d5   :  { %1584 = vpow2.f32 %v1019_v60  ;;  %v1234_v31 = vmul.f32 %v1579_v21, %v1202_v28 }
 0x2d6   :  { %1586 = vpow2.f32 %v1017_v55  ;;  %v1583_v4 = vpop.eup %1582  ;;  %v1265_v2 = vmul.f32 %v2189_v25, %v1233_v0 }
 0x2d7   :  { %v1266_v30 = vmul.f32 %v2192_v52, %v1234_v31  ;;  %v1171_v49 = vmul.f32 %v1583_v4, %v1061_v40 }
 0x2d8   :  { %v1121_v1 = vpop.xlane.xlu0 %1120  ;;  %1297 = vst.msk [vmem:[%s2484_s7 + $0x30] sm:$0xff] %vm842_vm3, %v1265_v2  ;;  %1129 = vadd.xlane.f32.xlu0 %v1128_v20 }
 0x2d9   :  { %v1064_v23 = vpop.xlane.xlu2 %1063  ;;  %1588 = vrcp.f32 %v1121_v1  ;;  %1298 = vst.msk [vmem:[%s2484_s7 + $0x38] sm:$0xff] %vm842_vm3, %v1266_v30  ;;  %v1203_v25 = vsub.f32 2.0, %v1171_v49 }
 0x2da   :  { %1590 = vrcp.f32 %v1064_v23 }
 0x2db   :  { %v2356_v52 = vpop.eup %1584  ;;  %1592 = vpow2.f32 %v1031_v7  ;;  %v1235_v19 = vmul.f32 %v1583_v4, %v1203_v25 }
 0x2dc   :  { %v2358_v9 = vpop.eup %1586  ;;  %1594 = vpow2.f32 %v1029_v61  ;;  %v1107_v13 = vsel %vm842_vm3, %v2356_v52, 0.0 }
 0x2dd   :  { %v1104_v3 = vsel %vm842_vm3, %v2358_v9, 0.0  ;;  %1108 = vadd.xlane.f32.xlu2 %v1107_v13  ;;  %v1267_v6 = vmul.f32 %v2208_v5, %v1235_v19 }
 0x2de   :  { %1105 = vadd.xlane.f32.xlu1 %v1104_v3 }
 0x2df   :  { %v1589_v41 = vpop.eup %1588  ;;  %1299 = vst.msk [vmem:[%s2484_s7 + $0x40] sm:$0xff] %vm842_vm3, %v1267_v6 }
 0x2e0   :  { %v1591_v15 = vpop.eup %1590  ;;  %v1191_v8 = vmul.f32 %v1589_v41, %v1121_v1  ;;  %v1067_v22 = vpop.xlane.xlu0 %1066 }
 0x2e1   :  { %v2369_v24 = vpop.eup %1592  ;;  %v1172_v11 = vmul.f32 %v1591_v15, %v1064_v23  ;;  %1596 = vrcp.f32 %v1067_v22 }
 0x2e2   :  { %v2371_v29 = vpop.eup %1594  ;;  %v1223_v46 = vsub.f32 2.0, %v1191_v8  ;;  %v1125_v5 = vsel %vm842_vm3, %v2369_v24, 0.0 }
 0x2e3   :  { %v1204_v35 = vsub.f32 2.0, %v1172_v11  ;;  %v1122_v37 = vsel %vm842_vm3, %v2371_v29, 0.0 }
 0x2e4   :  { %v1255_v32 = vmul.f32 %v1589_v41, %v1223_v46 }
 0x2e5   :  { %v1236_v33 = vmul.f32 %v1591_v15, %v1204_v35  ;;  %1126 = vadd.xlane.f32.xlu2 %v1125_v5 }
 0x2e6   :  { %v1287_v39 = vmul.f32 %v2216_v27, %v1255_v32  ;;  %1123 = vadd.xlane.f32.xlu1 %v1122_v37 }
 0x2e7   :  { %v1597_v18 = vpop.eup %1596  ;;  %v1268_v40 = vmul.f32 %v2219_v14, %v1236_v33  ;;  %v1070_v43 = vpop.xlane.xlu1 %1069 }
 0x2e8   :  { %1319 = vst.msk [vmem:[%s2484_s7 + $0xe0] sm:$0xff] %vm842_vm3, %v1287_v39  ;;  %v1173_v50 = vmul.f32 %v1597_v18, %v1067_v22  ;;  %1598 = vrcp.f32 %v1070_v43 }
 0x2e9   :  { %1300 = vst.msk [vmem:[%s2484_s7 + $0x48] sm:$0xff] %vm842_vm3, %v1268_v40 }
 0x2ea   :  { %v1205_v21 = vsub.f32 2.0, %v1173_v50 }
 0x2ec   :  { %v1237_v51 = vmul.f32 %v1597_v18, %v1205_v21 }
 0x2ee   :  { %v1269_v27 = vmul.f32 %v2226_v26, %v1237_v51  ;;  %v1599_v53 = vpop.eup %1598 }
 0x2ef   :  { %v1174_v14 = vmul.f32 %v1599_v53, %v1070_v43  ;;  %v1073_v57 = vpop.xlane.xlu2 %1072 }
 0x2f0   :  { %1301 = vst.msk [vmem:[%s2484_s7 + $0x50] sm:$0xff] %vm842_vm3, %v1269_v27  ;;  %1600 = vrcp.f32 %v1073_v57 }
 0x2f1   :  { %v1206_v12 = vsub.f32 2.0, %v1174_v14 }
 0x2f3   :  { %v1238_v16 = vmul.f32 %v1599_v53, %v1206_v12 }
 0x2f5   :  { %v1270_v58 = vmul.f32 %v2231_v34, %v1238_v16 }
 0x2f6   :  { %v1601_v48 = vpop.eup %1600 }
 0x2f7   :  { %1302 = vst.msk [vmem:[%s2484_s7 + $0x58] sm:$0xff] %vm842_vm3, %v1270_v58  ;;  %v1175_v26 = vmul.f32 %v1601_v48, %v1073_v57  ;;  %v1076_v60 = vpop.xlane.xlu0 %1075 }
 0x2f8   :  { %1602 = vrcp.f32 %v1076_v60 }
 0x2f9   :  { %v1207_v59 = vsub.f32 2.0, %v1175_v26 }
 0x2fb   :  { %v1239_v28 = vmul.f32 %v1601_v48, %v1207_v59 }
 0x2fd   :  { %v1271_v55 = vmul.f32 %v2236_v44, %v1239_v28 }
 0x2fe   :  { %v1603_v0 = vpop.eup %1602 }
 0x2ff   :  { %1303 = vst.msk [vmem:[%s2484_s7 + $0x60] sm:$0xff] %vm842_vm3, %v1271_v55  ;;  %v1176_v34 = vmul.f32 %v1603_v0, %v1076_v60  ;;  %v1079_v31 = vpop.xlane.xlu1 %1078 }
 0x300   :  { %1604 = vrcp.f32 %v1079_v31 }
 0x301   :  { %v1208_v4 = vsub.f32 2.0, %v1176_v34 }
 0x303   :  { %v1240_v7 = vmul.f32 %v1603_v0, %v1208_v4 }
 0x305   :  { %v1272_v2 = vmul.f32 %v2241_v56, %v1240_v7 }
 0x306   :  { %v1605_v61 = vpop.eup %1604 }
 0x307   :  { %1304 = vst.msk [vmem:[%s2484_s7 + $0x68] sm:$0xff] %vm842_vm3, %v1272_v2  ;;  %v1177_v44 = vmul.f32 %v1605_v61, %v1079_v31  ;;  %v1082_v30 = vpop.xlane.xlu2 %1081 }
 0x308   :  { %1606 = vrcp.f32 %v1082_v30 }
 0x309   :  { %v1209_v49 = vsub.f32 2.0, %v1177_v44 }
 0x30b   :  { %v1241_v1 = vmul.f32 %v1605_v61, %v1209_v49 }
 0x30d   :  { %v1273_v20 = vmul.f32 %v2246_v36, %v1241_v1 }
 0x30e   :  { %v1607_v23 = vpop.eup %1606 }
 0x30f   :  { %1305 = vst.msk [vmem:[%s2484_s7 + $0x70] sm:$0xff] %vm842_vm3, %v1273_v20  ;;  %v1178_v56 = vmul.f32 %v1607_v23, %v1082_v30  ;;  %v1085_v25 = vpop.xlane.xlu0 %1084 }
 0x310   :  { %1608 = vrcp.f32 %v1085_v25 }
 0x311   :  { %v1210_v19 = vsub.f32 2.0, %v1178_v56 }
 0x313   :  { %v1242_v13 = vmul.f32 %v1607_v23, %v1210_v19 }
 0x315   :  { %v1274_v3 = vmul.f32 %v2251_v42, %v1242_v13 }
 0x316   :  { %v1609_v6 = vpop.eup %1608 }
 0x317   :  { %1306 = vst.msk [vmem:[%s2484_s7 + $0x78] sm:$0xff] %vm842_vm3, %v1274_v3  ;;  %v1179_v36 = vmul.f32 %v1609_v6, %v1085_v25  ;;  %v1088_v41 = vpop.xlane.xlu1 %1087 }
 0x318   :  { %1610 = vrcp.f32 %v1088_v41 }
 0x319   :  { %v1211_v15 = vsub.f32 2.0, %v1179_v36 }
 0x31b   :  { %v1243_v8 = vmul.f32 %v1609_v6, %v1211_v15 }
 0x31d   :  { %v1275_v22 = vmul.f32 %v2256_v45, %v1243_v8 }
 0x31e   :  { %v1611_v11 = vpop.eup %1610 }
 0x31f   :  { %1307 = vst.msk [vmem:[%s2484_s7 + $0x80] sm:$0xff] %vm842_vm3, %v1275_v22  ;;  %v1180_v42 = vmul.f32 %v1611_v11, %v1088_v41  ;;  %v1091_v46 = vpop.xlane.xlu2 %1090 }
 0x320   :  { %1612 = vrcp.f32 %v1091_v46 }
 0x321   :  { %v1212_v35 = vsub.f32 2.0, %v1180_v42 }
 0x323   :  { %v1244_v32 = vmul.f32 %v1611_v11, %v1212_v35 }
 0x325   :  { %v1276_v5 = vmul.f32 %v2266_v54, %v1244_v32 }
 0x326   :  { %v1613_v33 = vpop.eup %1612 }
 0x327   :  { %1308 = vst.msk [vmem:[%s2484_s7 + $0x88] sm:$0xff] %vm842_vm3, %v1276_v5  ;;  %v1181_v45 = vmul.f32 %v1613_v33, %v1091_v46  ;;  %v1094_v37 = vpop.xlane.xlu0 %1093 }
 0x328   :  { %1614 = vrcp.f32 %v1094_v37 }
 0x329   :  { %v1213_v39 = vsub.f32 2.0, %v1181_v45 }
 0x32b   :  { %v1245_v18 = vmul.f32 %v1613_v33, %v1213_v39 }
 0x32d   :  { %v1277_v40 = vmul.f32 %v2276_v62, %v1245_v18 }
 0x32e   :  { %v1615_v50 = vpop.eup %1614 }
 0x32f   :  { %1309 = vst.msk [vmem:[%s2484_s7 + $0x90] sm:$0xff] %vm842_vm3, %v1277_v40  ;;  %v1182_v54 = vmul.f32 %v1615_v50, %v1094_v37 }
 0x331   :  { %v1214_v43 = vsub.f32 2.0, %v1182_v54 }
 0x333   :  { %v1246_v21 = vmul.f32 %v1615_v50, %v1214_v43 }
 0x335   :  { %v1278_v51 = vmul.f32 %v2285_v38, %v1246_v21 }
 0x337   :  { %1310 = vst.msk [vmem:[%s2484_s7 + $0x98] sm:$0xff] %vm842_vm3, %v1278_v51  ;;  %v1097_v27 = vpop.xlane.xlu1 %1096 }
 0x338   :  { %1616 = vrcp.f32 %v1097_v27 }
 0x33b   :  { %v1100_v53 = vpop.xlane.xlu2 %1099 }
 0x33c   :  { %1618 = vrcp.f32 %v1100_v53 }
 0x33e   :  { %v1617_v62 = vpop.eup %1616 }
 0x33f   :  { %v1183_v14 = vmul.f32 %v1617_v62, %v1097_v27 }
 0x341   :  { %v1215_v57 = vsub.f32 2.0, %v1183_v14 }
 0x342   :  { %v1619_v12 = vpop.eup %1618 }
 0x343   :  { %v1247_v16 = vmul.f32 %v1617_v62, %v1215_v57  ;;  %v1184_v58 = vmul.f32 %v1619_v12, %v1100_v53  ;;  %v1103_v48 = vpop.xlane.xlu0 %1102 }
 0x344   :  { %1620 = vrcp.f32 %v1103_v48 }
 0x345   :  { %v1279_v26 = vmul.f32 %v2307_v17, %v1247_v16  ;;  %v1216_v38 = vsub.f32 2.0, %v1184_v58 }
 0x347   :  { %1311 = vst.msk [vmem:[%s2484_s7 + $0xa0] sm:$0xff] %vm842_vm3, %v1279_v26  ;;  %v1248_v60 = vmul.f32 %v1619_v12, %v1216_v38 }
 0x349   :  { %v1280_v59 = vmul.f32 %v2316_v47, %v1248_v60 }
 0x34a   :  { %v1621_v28 = vpop.eup %1620 }
 0x34b   :  { %1312 = vst.msk [vmem:[%s2484_s7 + $0xa8] sm:$0xff] %vm842_vm3, %v1280_v59  ;;  %v1185_v55 = vmul.f32 %v1621_v28, %v1103_v48  ;;  %v1130_v0 = vpop.xlane.xlu0 %1129 }
 0x34c   :  { %1622 = vrcp.f32 %v1130_v0 }
 0x34d   :  { %v1217_v34 = vsub.f32 2.0, %v1185_v55 }
 0x34f   :  { %v1249_v17 = vmul.f32 %v1621_v28, %v1217_v34 }
 0x350   :  { %v1109_v31 = vpop.xlane.xlu2 %1108 }
 0x351   :  { %v1106_v4 = vpop.xlane.xlu1 %1105  ;;  %1624 = vrcp.f32 %v1109_v31  ;;  %v1281_v7 = vmul.f32 %v2327_v63, %v1249_v17 }
 0x352   :  { %1626 = vrcp.f32 %v1106_v4  ;;  %v1623_v2 = vpop.eup %1622 }
 0x353   :  { %1313 = vst.msk [vmem:[%s2484_s7 + $0xb0] sm:$0xff] %vm842_vm3, %v1281_v7  ;;  %v1194_v47 = vmul.f32 %v1623_v2, %v1130_v0 }
 0x355   :  { %v1226_v61 = vsub.f32 2.0, %v1194_v47 }
 0x357   :  { %v1625_v44 = vpop.eup %1624  ;;  %v1258_v49 = vmul.f32 %v1623_v2, %v1226_v61 }
 0x358   :  { %v1627_v30 = vpop.eup %1626  ;;  %v1187_v1 = vmul.f32 %v1625_v44, %v1109_v31  ;;  %v1127_v20 = vpop.xlane.xlu2 %1126 }
 0x359   :  { %v1186_v23 = vmul.f32 %v1627_v30, %v1106_v4  ;;  %v1124_v56 = vpop.xlane.xlu1 %1123  ;;  %1628 = vrcp.f32 %v1127_v20  ;;  %v1290_v25 = vmul.f32 %v2342_v10, %v1258_v49 }
 0x35a   :  { %v1219_v63 = vsub.f32 2.0, %v1187_v1  ;;  %1630 = vrcp.f32 %v1124_v56 }
 0x35b   :  { %v1218_v19 = vsub.f32 2.0, %v1186_v23  ;;  %1322 = vst.msk [vmem:[%s2484_s7 + $0xf8] sm:$0xff] %vm842_vm3, %v1290_v25 }
 0x35c   :  { %v1251_v13 = vmul.f32 %v1625_v44, %v1219_v63 }
 0x35d   :  { %v1250_v3 = vmul.f32 %v1627_v30, %v1218_v19 }
 0x35e   :  { %v1283_v6 = vmul.f32 %v2356_v52, %v1251_v13 }
 0x35f   :  { %v1629_v36 = vpop.eup %1628  ;;  %v1282_v41 = vmul.f32 %v2358_v9, %v1250_v3 }
 0x360   :  { %v1631_v15 = vpop.eup %1630  ;;  %1315 = vst.msk [vmem:[%s2484_s7 + $0xc0] sm:$0xff] %vm842_vm3, %v1283_v6  ;;  %v1193_v10 = vmul.f32 %v1629_v36, %v1127_v20 }
 0x361   :  { %1314 = vst.msk [vmem:[%s2484_s7 + $0xb8] sm:$0xff] %vm842_vm3, %v1282_v41  ;;  %v1192_v8 = vmul.f32 %v1631_v15, %v1124_v56 }
 0x362   :  { %v1225_v22 = vsub.f32 2.0, %v1193_v10 }
 0x363   :  { %v1224_v11 = vsub.f32 2.0, %v1192_v8 }
 0x364   :  { %v1257_v42 = vmul.f32 %v1629_v36, %v1225_v22 }
 0x365   :  { %v1256_v52 = vmul.f32 %v1631_v15, %v1224_v11 }
 0x366   :  { %v1289_v46 = vmul.f32 %v2369_v24, %v1257_v42 }
 0x367   :  { %v1288_v9 = vmul.f32 %v2371_v29, %v1256_v52 }
 0x368   :  { %1321 = vst.msk [vmem:[%s2484_s7 + $0xf0] sm:$0xff] %vm842_vm3, %v1289_v46 }
 0x369   :  { %1320 = vst.msk [vmem:[%s2484_s7 + $0xe8] sm:$0xff] %vm842_vm3, %v1288_v9 }

</bundles_post_ra>
